<compile_context>
chip_gen: v7x
topology: tpu7x:2x2x1
jax: 0.10.0
libtpu: 0.0.40
codegen_flags: <defaults>
</compile_context>

<pallas_src>
import jax
import jax.numpy as jnp
from jax.experimental import pallas as pl
from jax.experimental.pallas import tpu as pltpu

N_EMBD = 24
N_HIDDEN = 128
VOCAB_SIZE = 27          # len(chars) + 1 stand-in
VOCAB_PAD = 32           # padded vocab rows for the folded embedding tables
BN_EPS = 1e-5            # nn.BatchNorm1d default eps
SEQ_LEN = 8              # three FlattenConsecutive(2) stages => T must be 8
PAD_LOGITS = 128         # lane-dense padded logits width (>= VOCAB_SIZE)


def _vmem_spec():
    return pl.BlockSpec(memory_space=pltpu.MemorySpace.VMEM)


# ------------------------------ fused Pallas kernel ------------------------------ #

def _group_pool_matrix(n, group):
    """(n, n) 0/1 matrix Q with Q[i, j] = 1 iff i//group == j//group.

    (row_vec @ Q)[j] = sum of row_vec over the `group` adjacent columns sharing j's
    viewed-BatchNorm channel, already broadcast back to every group member.
    """
    shift = {1: 0, 2: 1, 4: 2}[group]
    gi = jax.lax.shift_right_logical(
        jax.lax.broadcasted_iota(jnp.int32, (n, n), 0), shift)
    gj = jax.lax.shift_right_logical(
        jax.lax.broadcasted_iota(jnp.int32, (n, n), 1), shift)
    return (gi == gj).astype(jnp.float32)


def _bn_tanh(y, group, g_row, b_row, q):
    """Training-mode BatchNorm over (batch, `group` adjacent cols) + tanh.

    y: (B, H) block, g_row/b_row: (1, H), q: group-pool matrix (or None if group == 1).
    One-pass mean/variance (sum and sum-of-squares), biased variance like nn.BatchNorm1d.
    """
    count = y.shape[0] * group
    inv = 1.0 / float(count)
    s1 = jnp.sum(y, axis=0, keepdims=True)
    s2 = jnp.sum(y * y, axis=0, keepdims=True)
    if q is not None:
        s1 = jnp.dot(s1, q, preferred_element_type=jnp.float32)
        s2 = jnp.dot(s2, q, preferred_element_type=jnp.float32)
    mean = s1 * inv
    var = jnp.maximum(s2 * inv - mean * mean, 0.0)
    xn = (y - mean) * jax.lax.rsqrt(var + BN_EPS)
    return jnp.tanh(xn * g_row + b_row)


def _fused_forward_kernel(tok_ref, ewa_ref, ewb_ref, w2_ref, w3_ref,
                          wo_ref, bo_ref,
                          g1_ref, b1_ref, g2_ref, b2_ref, g3_ref, b3_ref,
                          o_ref):
    f32 = jnp.float32
    B = tok_ref.shape[0]             # batch
    V = ewa_ref.shape[0]             # padded vocab (32)
    H = ewa_ref.shape[1]             # 128

    tok = tok_ref[...]                                               # (B, 8) int32
    lane_iota = jax.lax.broadcasted_iota(jnp.int32, (B, V), 1)

    def onehot(s):                                                   # exact 0/1 selection
        return (lane_iota == tok[:, s:s + 1]).astype(f32)            # (B, V)

    q4 = _group_pool_matrix(H, 4)    # stage-1 viewed channels: 4 adjacent columns
    q2 = _group_pool_matrix(H, 2)    # stage-2 viewed channels: 2 adjacent columns

    ewa = ewa_ref[...]               # (V, H)  = emb @ w1[:, :N_EMBD].T   (even positions)
    ewb = ewb_ref[...]               # (V, H)  = emb @ w1[:, N_EMBD:].T   (odd positions)
    g1 = g1_ref[...]
    b1 = b1_ref[...]                 # (4, H)
    g2 = g2_ref[...]
    b2 = b2_ref[...]                 # (2, H)

    # ---- stage 1: embedding + FlattenConsecutive(2) + linear1 (bias=False) fused via the
    #      pre-folded tables, then batchnorm(.view(B,C,T)) + tanh per time step.
    a1 = []
    for t in range(SEQ_LEN // 2):
        h = (jnp.dot(onehot(2 * t), ewa, preferred_element_type=f32) +
             jnp.dot(onehot(2 * t + 1), ewb, preferred_element_type=f32))   # (B, H)
        a1.append(_bn_tanh(h, 4, g1[t:t + 1, :], b1[t:t + 1, :], q4))

    # ---- stage 2: FlattenConsecutive(2) + linear2 (bias=False) + batchnorm(view) + tanh
    w2 = w2_ref[...]                 # (2H, H)
    a2 = []
    for u in range(SEQ_LEN // 4):
        h = (jnp.dot(a1[2 * u], w2[:H, :], preferred_element_type=f32) +
             jnp.dot(a1[2 * u + 1], w2[H:, :], preferred_element_type=f32))
        a2.append(_bn_tanh(h, 2, g2[u:u + 1, :], b2[u:u + 1, :], q2))

    # ---- stage 3: FlattenConsecutive(2) + linear3 (bias=False) + plain batchnorm + tanh
    w3 = w3_ref[...]                 # (2H, H)
    h3 = (jnp.dot(a2[0], w3[:H, :], preferred_element_type=f32) +
          jnp.dot(a2[1], w3[H:, :], preferred_element_type=f32))
    a3 = _bn_tanh(h3, 1, g3_ref[...], b3_ref[...], None)

    # ---- output projection, lane-padded to PAD_LOGITS columns (dense stores)
    o_ref[...] = (jnp.dot(a3, wo_ref[...], preferred_element_type=f32)
                  + bo_ref[...]).astype(o_ref.dtype)


def fused_forward(tokens, prep):
    """tokens: (B, SEQ_LEN) int32 — the whole forward pass in one pallas_call."""
    B = tokens.shape[0]
    return pl.pallas_call(
        _fused_forward_kernel,
        out_shape=jax.ShapeDtypeStruct((B, PAD_LOGITS), jnp.float32),
        in_specs=[_vmem_spec()] * 13,
        out_specs=_vmem_spec(),
    )(tokens, prep["ewa"], prep["ewb"], prep["w2_t"], prep["w3_t"],
      prep["wo_pad"], prep["bo_pad"],
      prep["g1"], prep["b1"], prep["g2"], prep["b2"], prep["g3"], prep["b3"])


# ----------------------------------- JAX glue ------------------------------------ #

def _hdot(a, b):
    return jnp.dot(a, b, precision=jax.lax.Precision.HIGHEST)


def prepare_params(params):
    """One-time packing of the PyTorch-style params into kernel operands."""
    pad = PAD_LOGITS - VOCAB_SIZE
    vpad = VOCAB_PAD - VOCAB_SIZE
    g, b = params["bn_g"], params["bn_b"]
    # Fold embedding through linear1: logits1[b, t] = EWa[tok[b,2t]] + EWb[tok[b,2t+1]].
    ewa = _hdot(params["emb"], params["w1_t"][:N_EMBD, :])    # (27, 128)
    ewb = _hdot(params["emb"], params["w1_t"][N_EMBD:, :])    # (27, 128)
    return {
        "ewa": jnp.pad(ewa, ((0, vpad), (0, 0))),
        "ewb": jnp.pad(ewb, ((0, vpad), (0, 0))),
        "w2_t": params["w2_t"],
        "w3_t": params["w3_t"],
        "wo_pad": jnp.pad(params["wo_t"], ((0, 0), (0, pad))),
        "bo_pad": jnp.pad(params["bo"], ((0, 0), (0, pad))),
        # shared BatchNorm1d gamma/beta, pre-broadcast to each stage's flat
        # "viewed channel" layout: stage with view T uses gamma[flat_index // T].
        "g1": jnp.repeat(g, 4).reshape(4, N_HIDDEN),
        "b1": jnp.repeat(b, 4).reshape(4, N_HIDDEN),
        "g2": jnp.repeat(g, 2).reshape(2, N_HIDDEN),
        "b2": jnp.repeat(b, 2).reshape(2, N_HIDDEN),
        "g3": g.reshape(1, N_HIDDEN),
        "b3": b.reshape(1, N_HIDDEN),
    }


def custom_model_forward(prep, tokens):
    logits_pad = fused_forward(tokens.astype(jnp.int32), prep)   # (B, 128) lane-dense
    return logits_pad[:, :VOCAB_SIZE]


# --------------------------- pure-JAX reference check ----------------------------- #

def _ref_bn(x, gamma, beta):
    if x.ndim == 3:
        axes, g, b = (0, 2), gamma.reshape(1, -1, 1), beta.reshape(1, -1, 1)
    else:
        axes, g, b = (0,), gamma.reshape(1, -1), beta.reshape(1, -1)
    mean = jnp.mean(x, axis=axes, keepdims=True)
    var = jnp.mean((x - mean) ** 2, axis=axes, keepdims=True)
    return (x - mean) / jnp.sqrt(var + BN_EPS) * g + b


def _ref_mm(a, b):
    return jnp.matmul(a, b, precision=jax.lax.Precision.HIGHEST)


def reference_forward(params, tokens):
    B = tokens.shape[0]
    x = params["emb"][tokens]
    x = x.reshape(B, SEQ_LEN // 2, 2 * N_EMBD)                  # flatten(2)
    x = _ref_mm(x, params["w1_t"])                              # linear1
    Bq, T, C = x.shape
    x = jnp.tanh(_ref_bn(x.reshape(Bq, C, T), params["bn_g"],
                         params["bn_b"]).reshape(Bq, T, C))
    x = x.reshape(B, 2, 2 * N_HIDDEN)                           # flatten(2)
    x = _ref_mm(x, params["w2_t"])                              # linear2
    Bq, T, C = x.shape
    x = jnp.tanh(_ref_bn(x.reshape(Bq, C, T), params["bn_g"],
                         params["bn_b"]).reshape(Bq, T, C))
    x = x.reshape(B, 2 * N_HIDDEN)                              # flatten(2) + squeeze
    x = _ref_mm(x, params["w3_t"])                              # linear3
    x = jnp.tanh(_ref_bn(x, params["bn_g"], params["bn_b"]))
    return _ref_mm(x, params["wo_t"]) + params["bo"]            # output


# -------------------------------- params / main ----------------------------------- #

def init_params(key):
    ks = jax.random.split(key, 8)

    def lin_w_t(k, fan_in, fan_out):   # PyTorch-default-ish uniform init, pre-transposed
        bound = 1.0 / (fan_in ** 0.5)
        return jax.random.uniform(k, (fan_in, fan_out), jnp.float32, -bound, bound)

    return {
        "emb": jax.random.normal(ks[0], (VOCAB_SIZE, N_EMBD), jnp.float32),
        "w1_t": lin_w_t(ks[1], N_EMBD * 2, N_HIDDEN),
        "w2_t": lin_w_t(ks[2], N_HIDDEN * 2, N_HIDDEN),
        "w3_t": lin_w_t(ks[3], N_HIDDEN * 2, N_HIDDEN),
        "wo_t": lin_w_t(ks[4], N_HIDDEN, VOCAB_SIZE) * 0.1,     # init_weights(): output *= 0.1
        "bo": jax.random.uniform(ks[5], (1, VOCAB_SIZE), jnp.float32,
                                 -1.0 / (N_HIDDEN ** 0.5), 1.0 / (N_HIDDEN ** 0.5)),
        # non-default affine params (PyTorch default is ones/zeros) so the test
        # actually exercises the per-viewed-channel gamma/beta broadcast path.
        "bn_g": 1.0 + 0.1 * jax.random.normal(ks[6], (N_HIDDEN,), jnp.float32),
        "bn_b": 0.1 * jax.random.normal(ks[7], (N_HIDDEN,), jnp.float32),
    }


if __name__ == "__main__":
    key = jax.random.PRNGKey(0)
    kp, kt = jax.random.split(key)
    params = init_params(kp)
    prep = prepare_params(params)

    B = 16
    tokens = jax.random.randint(kt, (B, SEQ_LEN), 0, VOCAB_SIZE, dtype=jnp.int32)

    fwd = jax.jit(custom_model_forward)
    out = jax.block_until_ready(fwd(prep, tokens))

    ref = reference_forward(params, tokens)
    assert out.shape == (B, VOCAB_SIZE), out.shape
    max_err = float(jnp.max(jnp.abs(out - ref)))
    assert max_err < 2e-3, max_err     # typical observed error ~1e-5 (all-f32 path)

    print("KERNEL_OK")
</pallas_src>

<mosaic_0001>
module attributes {stable_mosaic.version = 11 : i64} {
  func.func @_fused_forward_kernel(%arg0: memref<16x8xi32, #tpu.memory_space<vmem>>, %arg1: memref<32x128xf32, #tpu.memory_space<vmem>>, %arg2: memref<32x128xf32, #tpu.memory_space<vmem>>, %arg3: memref<256x128xf32, #tpu.memory_space<vmem>>, %arg4: memref<256x128xf32, #tpu.memory_space<vmem>>, %arg5: memref<128x128xf32, #tpu.memory_space<vmem>>, %arg6: memref<1x128xf32, #tpu.memory_space<vmem>>, %arg7: memref<4x128xf32, #tpu.memory_space<vmem>>, %arg8: memref<4x128xf32, #tpu.memory_space<vmem>>, %arg9: memref<2x128xf32, #tpu.memory_space<vmem>>, %arg10: memref<2x128xf32, #tpu.memory_space<vmem>>, %arg11: memref<1x128xf32, #tpu.memory_space<vmem>>, %arg12: memref<1x128xf32, #tpu.memory_space<vmem>>, %arg13: memref<16x128xf32, #tpu.memory_space<vmem>>) attributes {dimension_semantics = [], scalar_prefetch = 0 : i64, scratch_operands = 0 : i64, tpu.core_type = #tpu.core_type<tc>} {
    %c0 = arith.constant 0 : index
    %c0_0 = arith.constant 0 : index
    %0 = vector.load %arg0[%c0, %c0_0] : memref<16x8xi32, #tpu.memory_space<vmem>>, vector<16x8xi32>
    %1 = tpu.iota {dimensions = array<i32: 1>} : vector<16x32xi32>
    %2 = tpu.iota {dimensions = array<i32: 0>} : vector<128x128xi32>
    %c2_i32 = arith.constant 2 : i32
    %3 = vector.broadcast %c2_i32 : i32 to vector<128x128xi32>
    %4 = arith.shrui %2, %3 : vector<128x128xi32>
    %5 = tpu.iota {dimensions = array<i32: 1>} : vector<128x128xi32>
    %c2_i32_1 = arith.constant 2 : i32
    %6 = vector.broadcast %c2_i32_1 : i32 to vector<128x128xi32>
    %7 = arith.shrui %5, %6 : vector<128x128xi32>
    %8 = arith.cmpi eq, %4, %7 : vector<128x128xi32>
    %9 = arith.extui %8 : vector<128x128xi1> to vector<128x128xi32>
    %10 = arith.sitofp %9 : vector<128x128xi32> to vector<128x128xf32>
    %11 = tpu.iota {dimensions = array<i32: 0>} : vector<128x128xi32>
    %c1_i32 = arith.constant 1 : i32
    %12 = vector.broadcast %c1_i32 : i32 to vector<128x128xi32>
    %13 = arith.shrui %11, %12 : vector<128x128xi32>
    %14 = tpu.iota {dimensions = array<i32: 1>} : vector<128x128xi32>
    %c1_i32_2 = arith.constant 1 : i32
    %15 = vector.broadcast %c1_i32_2 : i32 to vector<128x128xi32>
    %16 = arith.shrui %14, %15 : vector<128x128xi32>
    %17 = arith.cmpi eq, %13, %16 : vector<128x128xi32>
    %18 = arith.extui %17 : vector<128x128xi1> to vector<128x128xi32>
    %19 = arith.sitofp %18 : vector<128x128xi32> to vector<128x128xf32>
    %c0_3 = arith.constant 0 : index
    %c0_4 = arith.constant 0 : index
    %20 = vector.load %arg1[%c0_3, %c0_4] : memref<32x128xf32, #tpu.memory_space<vmem>>, vector<32x128xf32>
    %c0_5 = arith.constant 0 : index
    %c0_6 = arith.constant 0 : index
    %21 = vector.load %arg2[%c0_5, %c0_6] : memref<32x128xf32, #tpu.memory_space<vmem>>, vector<32x128xf32>
    %c0_7 = arith.constant 0 : index
    %c0_8 = arith.constant 0 : index
    %22 = vector.load %arg7[%c0_7, %c0_8] : memref<4x128xf32, #tpu.memory_space<vmem>>, vector<4x128xf32>
    %c0_9 = arith.constant 0 : index
    %c0_10 = arith.constant 0 : index
    %23 = vector.load %arg8[%c0_9, %c0_10] : memref<4x128xf32, #tpu.memory_space<vmem>>, vector<4x128xf32>
    %c0_11 = arith.constant 0 : index
    %c0_12 = arith.constant 0 : index
    %24 = vector.load %arg9[%c0_11, %c0_12] : memref<2x128xf32, #tpu.memory_space<vmem>>, vector<2x128xf32>
    %c0_13 = arith.constant 0 : index
    %c0_14 = arith.constant 0 : index
    %25 = vector.load %arg10[%c0_13, %c0_14] : memref<2x128xf32, #tpu.memory_space<vmem>>, vector<2x128xf32>
    %26 = vector.extract_strided_slice %0 {offsets = [0, 0], sizes = [16, 1], strides = [1, 1]} : vector<16x8xi32> to vector<16x1xi32>
    %27 = vector.broadcast %26 : vector<16x1xi32> to vector<16x32xi32>
    %28 = arith.cmpi eq, %1, %27 : vector<16x32xi32>
    %29 = arith.extui %28 : vector<16x32xi1> to vector<16x32xi32>
    %30 = arith.sitofp %29 : vector<16x32xi32> to vector<16x32xf32>
    %cst = arith.constant dense<0.000000e+00> : vector<16x128xf32>
    %31 = tpu.matmul %30, %20, %cst {dimension_numbers = #tpu.dot_dimension_numbers<[1], [0], [0], [1], [0, 0, 1, 1], [], []>} : vector<16x32xf32>, vector<32x128xf32>, vector<16x128xf32> -> vector<16x128xf32>
    %32 = vector.extract_strided_slice %0 {offsets = [0, 1], sizes = [16, 1], strides = [1, 1]} : vector<16x8xi32> to vector<16x1xi32>
    %33 = vector.broadcast %32 : vector<16x1xi32> to vector<16x32xi32>
    %34 = arith.cmpi eq, %1, %33 : vector<16x32xi32>
    %35 = arith.extui %34 : vector<16x32xi1> to vector<16x32xi32>
    %36 = arith.sitofp %35 : vector<16x32xi32> to vector<16x32xf32>
    %cst_15 = arith.constant dense<0.000000e+00> : vector<16x128xf32>
    %37 = tpu.matmul %36, %21, %cst_15 {dimension_numbers = #tpu.dot_dimension_numbers<[1], [0], [0], [1], [0, 0, 1, 1], [], []>} : vector<16x32xf32>, vector<32x128xf32>, vector<16x128xf32> -> vector<16x128xf32>
    %38 = arith.addf %31, %37 : vector<16x128xf32>
    %39 = vector.extract_strided_slice %22 {offsets = [0, 0], sizes = [1, 128], strides = [1, 1]} : vector<4x128xf32> to vector<1x128xf32>
    %40 = vector.extract_strided_slice %23 {offsets = [0, 0], sizes = [1, 128], strides = [1, 1]} : vector<4x128xf32> to vector<1x128xf32>
    %cst_16 = arith.constant dense<0.000000e+00> : vector<128xf32>
    %41 = vector.multi_reduction <add>, %38, %cst_16 [0] : vector<16x128xf32> to vector<128xf32>
    %42 = vector.shape_cast %41 : vector<128xf32> to vector<1x128xf32>
    %43 = arith.mulf %38, %38 : vector<16x128xf32>
    %cst_17 = arith.constant dense<0.000000e+00> : vector<128xf32>
    %44 = vector.multi_reduction <add>, %43, %cst_17 [0] : vector<16x128xf32> to vector<128xf32>
    %45 = vector.shape_cast %44 : vector<128xf32> to vector<1x128xf32>
    %cst_18 = arith.constant dense<0.000000e+00> : vector<1x128xf32>
    %46 = tpu.matmul %42, %10, %cst_18 {dimension_numbers = #tpu.dot_dimension_numbers<[1], [0], [0], [1], [0, 0, 1, 1], [], []>} : vector<1x128xf32>, vector<128x128xf32>, vector<1x128xf32> -> vector<1x128xf32>
    %cst_19 = arith.constant dense<0.000000e+00> : vector<1x128xf32>
    %47 = tpu.matmul %45, %10, %cst_19 {dimension_numbers = #tpu.dot_dimension_numbers<[1], [0], [0], [1], [0, 0, 1, 1], [], []>} : vector<1x128xf32>, vector<128x128xf32>, vector<1x128xf32> -> vector<1x128xf32>
    %cst_20 = arith.constant 1.562500e-02 : f32
    %48 = vector.broadcast %cst_20 : f32 to vector<1x128xf32>
    %49 = arith.mulf %46, %48 : vector<1x128xf32>
    %cst_21 = arith.constant 1.562500e-02 : f32
    %50 = vector.broadcast %cst_21 : f32 to vector<1x128xf32>
    %51 = arith.mulf %47, %50 : vector<1x128xf32>
    %52 = arith.mulf %49, %49 : vector<1x128xf32>
    %53 = arith.subf %51, %52 : vector<1x128xf32>
    %cst_22 = arith.constant 0.000000e+00 : f32
    %54 = vector.broadcast %cst_22 : f32 to vector<1x128xf32>
    %55 = arith.maximumf %53, %54 : vector<1x128xf32>
    %56 = vector.broadcast %49 : vector<1x128xf32> to vector<16x128xf32>
    %57 = arith.subf %38, %56 : vector<16x128xf32>
    %cst_23 = arith.constant 9.99999974E-6 : f32
    %58 = vector.broadcast %cst_23 : f32 to vector<1x128xf32>
    %59 = arith.addf %55, %58 : vector<1x128xf32>
    %60 = math.rsqrt %59 : vector<1x128xf32>
    %61 = vector.broadcast %60 : vector<1x128xf32> to vector<16x128xf32>
    %62 = arith.mulf %57, %61 : vector<16x128xf32>
    %63 = vector.broadcast %39 : vector<1x128xf32> to vector<16x128xf32>
    %64 = arith.mulf %62, %63 : vector<16x128xf32>
    %65 = vector.broadcast %40 : vector<1x128xf32> to vector<16x128xf32>
    %66 = arith.addf %64, %65 : vector<16x128xf32>
    %67 = math.tanh %66 : vector<16x128xf32>
    %68 = vector.extract_strided_slice %0 {offsets = [0, 2], sizes = [16, 1], strides = [1, 1]} : vector<16x8xi32> to vector<16x1xi32>
    %69 = vector.broadcast %68 : vector<16x1xi32> to vector<16x32xi32>
    %70 = arith.cmpi eq, %1, %69 : vector<16x32xi32>
    %71 = arith.extui %70 : vector<16x32xi1> to vector<16x32xi32>
    %72 = arith.sitofp %71 : vector<16x32xi32> to vector<16x32xf32>
    %cst_24 = arith.constant dense<0.000000e+00> : vector<16x128xf32>
    %73 = tpu.matmul %72, %20, %cst_24 {dimension_numbers = #tpu.dot_dimension_numbers<[1], [0], [0], [1], [0, 0, 1, 1], [], []>} : vector<16x32xf32>, vector<32x128xf32>, vector<16x128xf32> -> vector<16x128xf32>
    %74 = vector.extract_strided_slice %0 {offsets = [0, 3], sizes = [16, 1], strides = [1, 1]} : vector<16x8xi32> to vector<16x1xi32>
    %75 = vector.broadcast %74 : vector<16x1xi32> to vector<16x32xi32>
    %76 = arith.cmpi eq, %1, %75 : vector<16x32xi32>
    %77 = arith.extui %76 : vector<16x32xi1> to vector<16x32xi32>
    %78 = arith.sitofp %77 : vector<16x32xi32> to vector<16x32xf32>
    %cst_25 = arith.constant dense<0.000000e+00> : vector<16x128xf32>
    %79 = tpu.matmul %78, %21, %cst_25 {dimension_numbers = #tpu.dot_dimension_numbers<[1], [0], [0], [1], [0, 0, 1, 1], [], []>} : vector<16x32xf32>, vector<32x128xf32>, vector<16x128xf32> -> vector<16x128xf32>
    %80 = arith.addf %73, %79 : vector<16x128xf32>
    %81 = vector.extract_strided_slice %22 {offsets = [1, 0], sizes = [1, 128], strides = [1, 1]} : vector<4x128xf32> to vector<1x128xf32>
    %82 = vector.extract_strided_slice %23 {offsets = [1, 0], sizes = [1, 128], strides = [1, 1]} : vector<4x128xf32> to vector<1x128xf32>
    %cst_26 = arith.constant dense<0.000000e+00> : vector<128xf32>
    %83 = vector.multi_reduction <add>, %80, %cst_26 [0] : vector<16x128xf32> to vector<128xf32>
    %84 = vector.shape_cast %83 : vector<128xf32> to vector<1x128xf32>
    %85 = arith.mulf %80, %80 : vector<16x128xf32>
    %cst_27 = arith.constant dense<0.000000e+00> : vector<128xf32>
    %86 = vector.multi_reduction <add>, %85, %cst_27 [0] : vector<16x128xf32> to vector<128xf32>
    %87 = vector.shape_cast %86 : vector<128xf32> to vector<1x128xf32>
    %cst_28 = arith.constant dense<0.000000e+00> : vector<1x128xf32>
    %88 = tpu.matmul %84, %10, %cst_28 {dimension_numbers = #tpu.dot_dimension_numbers<[1], [0], [0], [1], [0, 0, 1, 1], [], []>} : vector<1x128xf32>, vector<128x128xf32>, vector<1x128xf32> -> vector<1x128xf32>
    %cst_29 = arith.constant dense<0.000000e+00> : vector<1x128xf32>
    %89 = tpu.matmul %87, %10, %cst_29 {dimension_numbers = #tpu.dot_dimension_numbers<[1], [0], [0], [1], [0, 0, 1, 1], [], []>} : vector<1x128xf32>, vector<128x128xf32>, vector<1x128xf32> -> vector<1x128xf32>
    %cst_30 = arith.constant 1.562500e-02 : f32
    %90 = vector.broadcast %cst_30 : f32 to vector<1x128xf32>
    %91 = arith.mulf %88, %90 : vector<1x128xf32>
    %cst_31 = arith.constant 1.562500e-02 : f32
    %92 = vector.broadcast %cst_31 : f32 to vector<1x128xf32>
    %93 = arith.mulf %89, %92 : vector<1x128xf32>
    %94 = arith.mulf %91, %91 : vector<1x128xf32>
    %95 = arith.subf %93, %94 : vector<1x128xf32>
    %cst_32 = arith.constant 0.000000e+00 : f32
    %96 = vector.broadcast %cst_32 : f32 to vector<1x128xf32>
    %97 = arith.maximumf %95, %96 : vector<1x128xf32>
    %98 = vector.broadcast %91 : vector<1x128xf32> to vector<16x128xf32>
    %99 = arith.subf %80, %98 : vector<16x128xf32>
    %cst_33 = arith.constant 9.99999974E-6 : f32
    %100 = vector.broadcast %cst_33 : f32 to vector<1x128xf32>
    %101 = arith.addf %97, %100 : vector<1x128xf32>
    %102 = math.rsqrt %101 : vector<1x128xf32>
    %103 = vector.broadcast %102 : vector<1x128xf32> to vector<16x128xf32>
    %104 = arith.mulf %99, %103 : vector<16x128xf32>
    %105 = vector.broadcast %81 : vector<1x128xf32> to vector<16x128xf32>
    %106 = arith.mulf %104, %105 : vector<16x128xf32>
    %107 = vector.broadcast %82 : vector<1x128xf32> to vector<16x128xf32>
    %108 = arith.addf %106, %107 : vector<16x128xf32>
    %109 = math.tanh %108 : vector<16x128xf32>
    %110 = vector.extract_strided_slice %0 {offsets = [0, 4], sizes = [16, 1], strides = [1, 1]} : vector<16x8xi32> to vector<16x1xi32>
    %111 = vector.broadcast %110 : vector<16x1xi32> to vector<16x32xi32>
    %112 = arith.cmpi eq, %1, %111 : vector<16x32xi32>
    %113 = arith.extui %112 : vector<16x32xi1> to vector<16x32xi32>
    %114 = arith.sitofp %113 : vector<16x32xi32> to vector<16x32xf32>
    %cst_34 = arith.constant dense<0.000000e+00> : vector<16x128xf32>
    %115 = tpu.matmul %114, %20, %cst_34 {dimension_numbers = #tpu.dot_dimension_numbers<[1], [0], [0], [1], [0, 0, 1, 1], [], []>} : vector<16x32xf32>, vector<32x128xf32>, vector<16x128xf32> -> vector<16x128xf32>
    %116 = vector.extract_strided_slice %0 {offsets = [0, 5], sizes = [16, 1], strides = [1, 1]} : vector<16x8xi32> to vector<16x1xi32>
    %117 = vector.broadcast %116 : vector<16x1xi32> to vector<16x32xi32>
    %118 = arith.cmpi eq, %1, %117 : vector<16x32xi32>
    %119 = arith.extui %118 : vector<16x32xi1> to vector<16x32xi32>
    %120 = arith.sitofp %119 : vector<16x32xi32> to vector<16x32xf32>
    %cst_35 = arith.constant dense<0.000000e+00> : vector<16x128xf32>
    %121 = tpu.matmul %120, %21, %cst_35 {dimension_numbers = #tpu.dot_dimension_numbers<[1], [0], [0], [1], [0, 0, 1, 1], [], []>} : vector<16x32xf32>, vector<32x128xf32>, vector<16x128xf32> -> vector<16x128xf32>
    %122 = arith.addf %115, %121 : vector<16x128xf32>
    %123 = vector.extract_strided_slice %22 {offsets = [2, 0], sizes = [1, 128], strides = [1, 1]} : vector<4x128xf32> to vector<1x128xf32>
    %124 = vector.extract_strided_slice %23 {offsets = [2, 0], sizes = [1, 128], strides = [1, 1]} : vector<4x128xf32> to vector<1x128xf32>
    %cst_36 = arith.constant dense<0.000000e+00> : vector<128xf32>
    %125 = vector.multi_reduction <add>, %122, %cst_36 [0] : vector<16x128xf32> to vector<128xf32>
    %126 = vector.shape_cast %125 : vector<128xf32> to vector<1x128xf32>
    %127 = arith.mulf %122, %122 : vector<16x128xf32>
    %cst_37 = arith.constant dense<0.000000e+00> : vector<128xf32>
    %128 = vector.multi_reduction <add>, %127, %cst_37 [0] : vector<16x128xf32> to vector<128xf32>
    %129 = vector.shape_cast %128 : vector<128xf32> to vector<1x128xf32>
    %cst_38 = arith.constant dense<0.000000e+00> : vector<1x128xf32>
    %130 = tpu.matmul %126, %10, %cst_38 {dimension_numbers = #tpu.dot_dimension_numbers<[1], [0], [0], [1], [0, 0, 1, 1], [], []>} : vector<1x128xf32>, vector<128x128xf32>, vector<1x128xf32> -> vector<1x128xf32>
    %cst_39 = arith.constant dense<0.000000e+00> : vector<1x128xf32>
    %131 = tpu.matmul %129, %10, %cst_39 {dimension_numbers = #tpu.dot_dimension_numbers<[1], [0], [0], [1], [0, 0, 1, 1], [], []>} : vector<1x128xf32>, vector<128x128xf32>, vector<1x128xf32> -> vector<1x128xf32>
    %cst_40 = arith.constant 1.562500e-02 : f32
    %132 = vector.broadcast %cst_40 : f32 to vector<1x128xf32>
    %133 = arith.mulf %130, %132 : vector<1x128xf32>
    %cst_41 = arith.constant 1.562500e-02 : f32
    %134 = vector.broadcast %cst_41 : f32 to vector<1x128xf32>
    %135 = arith.mulf %131, %134 : vector<1x128xf32>
    %136 = arith.mulf %133, %133 : vector<1x128xf32>
    %137 = arith.subf %135, %136 : vector<1x128xf32>
    %cst_42 = arith.constant 0.000000e+00 : f32
    %138 = vector.broadcast %cst_42 : f32 to vector<1x128xf32>
    %139 = arith.maximumf %137, %138 : vector<1x128xf32>
    %140 = vector.broadcast %133 : vector<1x128xf32> to vector<16x128xf32>
    %141 = arith.subf %122, %140 : vector<16x128xf32>
    %cst_43 = arith.constant 9.99999974E-6 : f32
    %142 = vector.broadcast %cst_43 : f32 to vector<1x128xf32>
    %143 = arith.addf %139, %142 : vector<1x128xf32>
    %144 = math.rsqrt %143 : vector<1x128xf32>
    %145 = vector.broadcast %144 : vector<1x128xf32> to vector<16x128xf32>
    %146 = arith.mulf %141, %145 : vector<16x128xf32>
    %147 = vector.broadcast %123 : vector<1x128xf32> to vector<16x128xf32>
    %148 = arith.mulf %146, %147 : vector<16x128xf32>
    %149 = vector.broadcast %124 : vector<1x128xf32> to vector<16x128xf32>
    %150 = arith.addf %148, %149 : vector<16x128xf32>
    %151 = math.tanh %150 : vector<16x128xf32>
    %152 = vector.extract_strided_slice %0 {offsets = [0, 6], sizes = [16, 1], strides = [1, 1]} : vector<16x8xi32> to vector<16x1xi32>
    %153 = vector.broadcast %152 : vector<16x1xi32> to vector<16x32xi32>
    %154 = arith.cmpi eq, %1, %153 : vector<16x32xi32>
    %155 = arith.extui %154 : vector<16x32xi1> to vector<16x32xi32>
    %156 = arith.sitofp %155 : vector<16x32xi32> to vector<16x32xf32>
    %cst_44 = arith.constant dense<0.000000e+00> : vector<16x128xf32>
    %157 = tpu.matmul %156, %20, %cst_44 {dimension_numbers = #tpu.dot_dimension_numbers<[1], [0], [0], [1], [0, 0, 1, 1], [], []>} : vector<16x32xf32>, vector<32x128xf32>, vector<16x128xf32> -> vector<16x128xf32>
    %158 = vector.extract_strided_slice %0 {offsets = [0, 7], sizes = [16, 1], strides = [1, 1]} : vector<16x8xi32> to vector<16x1xi32>
    %159 = vector.broadcast %158 : vector<16x1xi32> to vector<16x32xi32>
    %160 = arith.cmpi eq, %1, %159 : vector<16x32xi32>
    %161 = arith.extui %160 : vector<16x32xi1> to vector<16x32xi32>
    %162 = arith.sitofp %161 : vector<16x32xi32> to vector<16x32xf32>
    %cst_45 = arith.constant dense<0.000000e+00> : vector<16x128xf32>
    %163 = tpu.matmul %162, %21, %cst_45 {dimension_numbers = #tpu.dot_dimension_numbers<[1], [0], [0], [1], [0, 0, 1, 1], [], []>} : vector<16x32xf32>, vector<32x128xf32>, vector<16x128xf32> -> vector<16x128xf32>
    %164 = arith.addf %157, %163 : vector<16x128xf32>
    %165 = vector.extract_strided_slice %22 {offsets = [3, 0], sizes = [1, 128], strides = [1, 1]} : vector<4x128xf32> to vector<1x128xf32>
    %166 = vector.extract_strided_slice %23 {offsets = [3, 0], sizes = [1, 128], strides = [1, 1]} : vector<4x128xf32> to vector<1x128xf32>
    %cst_46 = arith.constant dense<0.000000e+00> : vector<128xf32>
    %167 = vector.multi_reduction <add>, %164, %cst_46 [0] : vector<16x128xf32> to vector<128xf32>
    %168 = vector.shape_cast %167 : vector<128xf32> to vector<1x128xf32>
    %169 = arith.mulf %164, %164 : vector<16x128xf32>
    %cst_47 = arith.constant dense<0.000000e+00> : vector<128xf32>
    %170 = vector.multi_reduction <add>, %169, %cst_47 [0] : vector<16x128xf32> to vector<128xf32>
    %171 = vector.shape_cast %170 : vector<128xf32> to vector<1x128xf32>
    %cst_48 = arith.constant dense<0.000000e+00> : vector<1x128xf32>
    %172 = tpu.matmul %168, %10, %cst_48 {dimension_numbers = #tpu.dot_dimension_numbers<[1], [0], [0], [1], [0, 0, 1, 1], [], []>} : vector<1x128xf32>, vector<128x128xf32>, vector<1x128xf32> -> vector<1x128xf32>
    %cst_49 = arith.constant dense<0.000000e+00> : vector<1x128xf32>
    %173 = tpu.matmul %171, %10, %cst_49 {dimension_numbers = #tpu.dot_dimension_numbers<[1], [0], [0], [1], [0, 0, 1, 1], [], []>} : vector<1x128xf32>, vector<128x128xf32>, vector<1x128xf32> -> vector<1x128xf32>
    %cst_50 = arith.constant 1.562500e-02 : f32
    %174 = vector.broadcast %cst_50 : f32 to vector<1x128xf32>
    %175 = arith.mulf %172, %174 : vector<1x128xf32>
    %cst_51 = arith.constant 1.562500e-02 : f32
    %176 = vector.broadcast %cst_51 : f32 to vector<1x128xf32>
    %177 = arith.mulf %173, %176 : vector<1x128xf32>
    %178 = arith.mulf %175, %175 : vector<1x128xf32>
    %179 = arith.subf %177, %178 : vector<1x128xf32>
    %cst_52 = arith.constant 0.000000e+00 : f32
    %180 = vector.broadcast %cst_52 : f32 to vector<1x128xf32>
    %181 = arith.maximumf %179, %180 : vector<1x128xf32>
    %182 = vector.broadcast %175 : vector<1x128xf32> to vector<16x128xf32>
    %183 = arith.subf %164, %182 : vector<16x128xf32>
    %cst_53 = arith.constant 9.99999974E-6 : f32
    %184 = vector.broadcast %cst_53 : f32 to vector<1x128xf32>
    %185 = arith.addf %181, %184 : vector<1x128xf32>
    %186 = math.rsqrt %185 : vector<1x128xf32>
    %187 = vector.broadcast %186 : vector<1x128xf32> to vector<16x128xf32>
    %188 = arith.mulf %183, %187 : vector<16x128xf32>
    %189 = vector.broadcast %165 : vector<1x128xf32> to vector<16x128xf32>
    %190 = arith.mulf %188, %189 : vector<16x128xf32>
    %191 = vector.broadcast %166 : vector<1x128xf32> to vector<16x128xf32>
    %192 = arith.addf %190, %191 : vector<16x128xf32>
    %193 = math.tanh %192 : vector<16x128xf32>
    %c0_54 = arith.constant 0 : index
    %c0_55 = arith.constant 0 : index
    %194 = vector.load %arg3[%c0_54, %c0_55] : memref<256x128xf32, #tpu.memory_space<vmem>>, vector<256x128xf32>
    %195 = vector.extract_strided_slice %194 {offsets = [0, 0], sizes = [128, 128], strides = [1, 1]} : vector<256x128xf32> to vector<128x128xf32>
    %cst_56 = arith.constant dense<0.000000e+00> : vector<16x128xf32>
    %196 = tpu.matmul %67, %195, %cst_56 {dimension_numbers = #tpu.dot_dimension_numbers<[1], [0], [0], [1], [0, 0, 1, 1], [], []>} : vector<16x128xf32>, vector<128x128xf32>, vector<16x128xf32> -> vector<16x128xf32>
    %197 = vector.extract_strided_slice %194 {offsets = [128, 0], sizes = [128, 128], strides = [1, 1]} : vector<256x128xf32> to vector<128x128xf32>
    %cst_57 = arith.constant dense<0.000000e+00> : vector<16x128xf32>
    %198 = tpu.matmul %109, %197, %cst_57 {dimension_numbers = #tpu.dot_dimension_numbers<[1], [0], [0], [1], [0, 0, 1, 1], [], []>} : vector<16x128xf32>, vector<128x128xf32>, vector<16x128xf32> -> vector<16x128xf32>
    %199 = arith.addf %196, %198 : vector<16x128xf32>
    %200 = vector.extract_strided_slice %24 {offsets = [0, 0], sizes = [1, 128], strides = [1, 1]} : vector<2x128xf32> to vector<1x128xf32>
    %201 = vector.extract_strided_slice %25 {offsets = [0, 0], sizes = [1, 128], strides = [1, 1]} : vector<2x128xf32> to vector<1x128xf32>
    %cst_58 = arith.constant dense<0.000000e+00> : vector<128xf32>
    %202 = vector.multi_reduction <add>, %199, %cst_58 [0] : vector<16x128xf32> to vector<128xf32>
    %203 = vector.shape_cast %202 : vector<128xf32> to vector<1x128xf32>
    %204 = arith.mulf %199, %199 : vector<16x128xf32>
    %cst_59 = arith.constant dense<0.000000e+00> : vector<128xf32>
    %205 = vector.multi_reduction <add>, %204, %cst_59 [0] : vector<16x128xf32> to vector<128xf32>
    %206 = vector.shape_cast %205 : vector<128xf32> to vector<1x128xf32>
    %cst_60 = arith.constant dense<0.000000e+00> : vector<1x128xf32>
    %207 = tpu.matmul %203, %19, %cst_60 {dimension_numbers = #tpu.dot_dimension_numbers<[1], [0], [0], [1], [0, 0, 1, 1], [], []>} : vector<1x128xf32>, vector<128x128xf32>, vector<1x128xf32> -> vector<1x128xf32>
    %cst_61 = arith.constant dense<0.000000e+00> : vector<1x128xf32>
    %208 = tpu.matmul %206, %19, %cst_61 {dimension_numbers = #tpu.dot_dimension_numbers<[1], [0], [0], [1], [0, 0, 1, 1], [], []>} : vector<1x128xf32>, vector<128x128xf32>, vector<1x128xf32> -> vector<1x128xf32>
    %cst_62 = arith.constant 3.125000e-02 : f32
    %209 = vector.broadcast %cst_62 : f32 to vector<1x128xf32>
    %210 = arith.mulf %207, %209 : vector<1x128xf32>
    %cst_63 = arith.constant 3.125000e-02 : f32
    %211 = vector.broadcast %cst_63 : f32 to vector<1x128xf32>
    %212 = arith.mulf %208, %211 : vector<1x128xf32>
    %213 = arith.mulf %210, %210 : vector<1x128xf32>
    %214 = arith.subf %212, %213 : vector<1x128xf32>
    %cst_64 = arith.constant 0.000000e+00 : f32
    %215 = vector.broadcast %cst_64 : f32 to vector<1x128xf32>
    %216 = arith.maximumf %214, %215 : vector<1x128xf32>
    %217 = vector.broadcast %210 : vector<1x128xf32> to vector<16x128xf32>
    %218 = arith.subf %199, %217 : vector<16x128xf32>
    %cst_65 = arith.constant 9.99999974E-6 : f32
    %219 = vector.broadcast %cst_65 : f32 to vector<1x128xf32>
    %220 = arith.addf %216, %219 : vector<1x128xf32>
    %221 = math.rsqrt %220 : vector<1x128xf32>
    %222 = vector.broadcast %221 : vector<1x128xf32> to vector<16x128xf32>
    %223 = arith.mulf %218, %222 : vector<16x128xf32>
    %224 = vector.broadcast %200 : vector<1x128xf32> to vector<16x128xf32>
    %225 = arith.mulf %223, %224 : vector<16x128xf32>
    %226 = vector.broadcast %201 : vector<1x128xf32> to vector<16x128xf32>
    %227 = arith.addf %225, %226 : vector<16x128xf32>
    %228 = math.tanh %227 : vector<16x128xf32>
    %229 = vector.extract_strided_slice %194 {offsets = [0, 0], sizes = [128, 128], strides = [1, 1]} : vector<256x128xf32> to vector<128x128xf32>
    %cst_66 = arith.constant dense<0.000000e+00> : vector<16x128xf32>
    %230 = tpu.matmul %151, %229, %cst_66 {dimension_numbers = #tpu.dot_dimension_numbers<[1], [0], [0], [1], [0, 0, 1, 1], [], []>} : vector<16x128xf32>, vector<128x128xf32>, vector<16x128xf32> -> vector<16x128xf32>
    %231 = vector.extract_strided_slice %194 {offsets = [128, 0], sizes = [128, 128], strides = [1, 1]} : vector<256x128xf32> to vector<128x128xf32>
    %cst_67 = arith.constant dense<0.000000e+00> : vector<16x128xf32>
    %232 = tpu.matmul %193, %231, %cst_67 {dimension_numbers = #tpu.dot_dimension_numbers<[1], [0], [0], [1], [0, 0, 1, 1], [], []>} : vector<16x128xf32>, vector<128x128xf32>, vector<16x128xf32> -> vector<16x128xf32>
    %233 = arith.addf %230, %232 : vector<16x128xf32>
    %234 = vector.extract_strided_slice %24 {offsets = [1, 0], sizes = [1, 128], strides = [1, 1]} : vector<2x128xf32> to vector<1x128xf32>
    %235 = vector.extract_strided_slice %25 {offsets = [1, 0], sizes = [1, 128], strides = [1, 1]} : vector<2x128xf32> to vector<1x128xf32>
    %cst_68 = arith.constant dense<0.000000e+00> : vector<128xf32>
    %236 = vector.multi_reduction <add>, %233, %cst_68 [0] : vector<16x128xf32> to vector<128xf32>
    %237 = vector.shape_cast %236 : vector<128xf32> to vector<1x128xf32>
    %238 = arith.mulf %233, %233 : vector<16x128xf32>
    %cst_69 = arith.constant dense<0.000000e+00> : vector<128xf32>
    %239 = vector.multi_reduction <add>, %238, %cst_69 [0] : vector<16x128xf32> to vector<128xf32>
    %240 = vector.shape_cast %239 : vector<128xf32> to vector<1x128xf32>
    %cst_70 = arith.constant dense<0.000000e+00> : vector<1x128xf32>
    %241 = tpu.matmul %237, %19, %cst_70 {dimension_numbers = #tpu.dot_dimension_numbers<[1], [0], [0], [1], [0, 0, 1, 1], [], []>} : vector<1x128xf32>, vector<128x128xf32>, vector<1x128xf32> -> vector<1x128xf32>
    %cst_71 = arith.constant dense<0.000000e+00> : vector<1x128xf32>
    %242 = tpu.matmul %240, %19, %cst_71 {dimension_numbers = #tpu.dot_dimension_numbers<[1], [0], [0], [1], [0, 0, 1, 1], [], []>} : vector<1x128xf32>, vector<128x128xf32>, vector<1x128xf32> -> vector<1x128xf32>
    %cst_72 = arith.constant 3.125000e-02 : f32
    %243 = vector.broadcast %cst_72 : f32 to vector<1x128xf32>
    %244 = arith.mulf %241, %243 : vector<1x128xf32>
    %cst_73 = arith.constant 3.125000e-02 : f32
    %245 = vector.broadcast %cst_73 : f32 to vector<1x128xf32>
    %246 = arith.mulf %242, %245 : vector<1x128xf32>
    %247 = arith.mulf %244, %244 : vector<1x128xf32>
    %248 = arith.subf %246, %247 : vector<1x128xf32>
    %cst_74 = arith.constant 0.000000e+00 : f32
    %249 = vector.broadcast %cst_74 : f32 to vector<1x128xf32>
    %250 = arith.maximumf %248, %249 : vector<1x128xf32>
    %251 = vector.broadcast %244 : vector<1x128xf32> to vector<16x128xf32>
    %252 = arith.subf %233, %251 : vector<16x128xf32>
    %cst_75 = arith.constant 9.99999974E-6 : f32
    %253 = vector.broadcast %cst_75 : f32 to vector<1x128xf32>
    %254 = arith.addf %250, %253 : vector<1x128xf32>
    %255 = math.rsqrt %254 : vector<1x128xf32>
    %256 = vector.broadcast %255 : vector<1x128xf32> to vector<16x128xf32>
    %257 = arith.mulf %252, %256 : vector<16x128xf32>
    %258 = vector.broadcast %234 : vector<1x128xf32> to vector<16x128xf32>
    %259 = arith.mulf %257, %258 : vector<16x128xf32>
    %260 = vector.broadcast %235 : vector<1x128xf32> to vector<16x128xf32>
    %261 = arith.addf %259, %260 : vector<16x128xf32>
    %262 = math.tanh %261 : vector<16x128xf32>
    %c0_76 = arith.constant 0 : index
    %c0_77 = arith.constant 0 : index
    %263 = vector.load %arg4[%c0_76, %c0_77] : memref<256x128xf32, #tpu.memory_space<vmem>>, vector<256x128xf32>
    %264 = vector.extract_strided_slice %263 {offsets = [0, 0], sizes = [128, 128], strides = [1, 1]} : vector<256x128xf32> to vector<128x128xf32>
    %cst_78 = arith.constant dense<0.000000e+00> : vector<16x128xf32>
    %265 = tpu.matmul %228, %264, %cst_78 {dimension_numbers = #tpu.dot_dimension_numbers<[1], [0], [0], [1], [0, 0, 1, 1], [], []>} : vector<16x128xf32>, vector<128x128xf32>, vector<16x128xf32> -> vector<16x128xf32>
    %266 = vector.extract_strided_slice %263 {offsets = [128, 0], sizes = [128, 128], strides = [1, 1]} : vector<256x128xf32> to vector<128x128xf32>
    %cst_79 = arith.constant dense<0.000000e+00> : vector<16x128xf32>
    %267 = tpu.matmul %262, %266, %cst_79 {dimension_numbers = #tpu.dot_dimension_numbers<[1], [0], [0], [1], [0, 0, 1, 1], [], []>} : vector<16x128xf32>, vector<128x128xf32>, vector<16x128xf32> -> vector<16x128xf32>
    %268 = arith.addf %265, %267 : vector<16x128xf32>
    %c0_80 = arith.constant 0 : index
    %c0_81 = arith.constant 0 : index
    %269 = vector.load %arg11[%c0_80, %c0_81] : memref<1x128xf32, #tpu.memory_space<vmem>>, vector<1x128xf32>
    %c0_82 = arith.constant 0 : index
    %c0_83 = arith.constant 0 : index
    %270 = vector.load %arg12[%c0_82, %c0_83] : memref<1x128xf32, #tpu.memory_space<vmem>>, vector<1x128xf32>
    %cst_84 = arith.constant dense<0.000000e+00> : vector<128xf32>
    %271 = vector.multi_reduction <add>, %268, %cst_84 [0] : vector<16x128xf32> to vector<128xf32>
    %272 = vector.shape_cast %271 : vector<128xf32> to vector<1x128xf32>
    %273 = arith.mulf %268, %268 : vector<16x128xf32>
    %cst_85 = arith.constant dense<0.000000e+00> : vector<128xf32>
    %274 = vector.multi_reduction <add>, %273, %cst_85 [0] : vector<16x128xf32> to vector<128xf32>
    %275 = vector.shape_cast %274 : vector<128xf32> to vector<1x128xf32>
    %cst_86 = arith.constant 6.250000e-02 : f32
    %276 = vector.broadcast %cst_86 : f32 to vector<1x128xf32>
    %277 = arith.mulf %272, %276 : vector<1x128xf32>
    %cst_87 = arith.constant 6.250000e-02 : f32
    %278 = vector.broadcast %cst_87 : f32 to vector<1x128xf32>
    %279 = arith.mulf %275, %278 : vector<1x128xf32>
    %280 = arith.mulf %277, %277 : vector<1x128xf32>
    %281 = arith.subf %279, %280 : vector<1x128xf32>
    %cst_88 = arith.constant 0.000000e+00 : f32
    %282 = vector.broadcast %cst_88 : f32 to vector<1x128xf32>
    %283 = arith.maximumf %281, %282 : vector<1x128xf32>
    %284 = vector.broadcast %277 : vector<1x128xf32> to vector<16x128xf32>
    %285 = arith.subf %268, %284 : vector<16x128xf32>
    %cst_89 = arith.constant 9.99999974E-6 : f32
    %286 = vector.broadcast %cst_89 : f32 to vector<1x128xf32>
    %287 = arith.addf %283, %286 : vector<1x128xf32>
    %288 = math.rsqrt %287 : vector<1x128xf32>
    %289 = vector.broadcast %288 : vector<1x128xf32> to vector<16x128xf32>
    %290 = arith.mulf %285, %289 : vector<16x128xf32>
    %291 = vector.broadcast %269 : vector<1x128xf32> to vector<16x128xf32>
    %292 = arith.mulf %290, %291 : vector<16x128xf32>
    %293 = vector.broadcast %270 : vector<1x128xf32> to vector<16x128xf32>
    %294 = arith.addf %292, %293 : vector<16x128xf32>
    %295 = math.tanh %294 : vector<16x128xf32>
    %c0_90 = arith.constant 0 : index
    %c0_91 = arith.constant 0 : index
    %296 = vector.load %arg5[%c0_90, %c0_91] : memref<128x128xf32, #tpu.memory_space<vmem>>, vector<128x128xf32>
    %cst_92 = arith.constant dense<0.000000e+00> : vector<16x128xf32>
    %297 = tpu.matmul %295, %296, %cst_92 {dimension_numbers = #tpu.dot_dimension_numbers<[1], [0], [0], [1], [0, 0, 1, 1], [], []>} : vector<16x128xf32>, vector<128x128xf32>, vector<16x128xf32> -> vector<16x128xf32>
    %c0_93 = arith.constant 0 : index
    %c0_94 = arith.constant 0 : index
    %298 = vector.load %arg6[%c0_93, %c0_94] : memref<1x128xf32, #tpu.memory_space<vmem>>, vector<1x128xf32>
    %299 = vector.broadcast %298 : vector<1x128xf32> to vector<16x128xf32>
    %300 = arith.addf %297, %299 : vector<16x128xf32>
    %c0_95 = arith.constant 0 : index
    %c0_96 = arith.constant 0 : index
    %301 = vector.load %arg13[%c0_95, %c0_96] : memref<16x128xf32, #tpu.memory_space<vmem>>, vector<16x128xf32>
    tpu.vector_store %arg13[%c0_95, %c0_96], %300 {strides = array<i32>} : memref<16x128xf32, #tpu.memory_space<vmem>>, vector<16x128xf32>,
    return
  }
}

</mosaic_0001>

<bundles_post_ra>
// kernel: custom_model_forward.1
= control target key start
LH: loop header
LB: loop body
LE: loop exit
PB: predicated region body
PF: predicated region fallthrough
CT: control target
= control target key end

     0   :  { %18 = vsyncpa [#allocation3], 0  ;;  %s6307_s0 = inlined_call_operand.vmem [shape: s32[16,8], index: 0, kind: input, shape index: {}]   ;;  %s6308_s1 = inlined_call_operand.vmem [shape: f32[32,128], index: 1, kind: input, shape index: {}]   ;;  %s6309_s2 = inlined_call_operand.hbm [shape: f32[32,128], index: 2, kind: input, shape index: {}]   ;;  %s6310_s3 = inlined_call_operand.hbm [shape: f32[256,128], index: 3, kind: input, shape index: {}]   ;;  %s6311_s4 = inlined_call_operand.hbm [shape: f32[256,128], index: 4, kind: input, shape index: {}]   ;;  %s6312_s5 = inlined_call_operand.hbm [shape: f32[128,128], index: 5, kind: input, shape index: {}]   ;;  %s6313_s6 = inlined_call_operand.hbm [shape: f32[1,128], index: 6, kind: input, shape index: {}]   ;;  %s6314_s7 = inlined_call_operand.vmem [shape: f32[4,128], index: 7, kind: input, shape index: {}]   ;;  %s6315_s8 = inlined_call_operand.hbm [shape: f32[4,128], index: 8, kind: input, shape index: {}]   ;;  %s6316_s9 = inlined_call_operand.vmem [shape: f32[2,128], index: 9, kind: input, shape index: {}]   ;;  %s6317_s10 = inlined_call_operand.hbm [shape: f32[2,128], index: 10, kind: input, shape index: {}]   ;;  %s6318_s11 = inlined_call_operand.vmem [shape: f32[1,128], index: 11, kind: input, shape index: {}]   ;;  %s6319_s12 = inlined_call_operand.hbm [shape: f32[1,128], index: 12, kind: input, shape index: {}]   ;;  %s6320_s13 = inlined_call_operand.hbm [shape: f32[16,128], index: 13, kind: output, shape index: {}]  }
   0x1   :  { %19 = vsyncpa [#allocation6], 0 }
   0x2   :  { %20 = vsyncpa [#allocation9], 0 }
   0x3   :  { %21 = vsyncpa [#allocation12], 0 }
   0x4   :  { %22 = vsyncpa [#allocation15], 0 }
   0x5   :  { %23 = vsyncpa [#allocation4], 0  ;;  %s5137_s25 = smov [#allocation5]   ;;  %s5138_s27 = smov [#allocation8]  }
   0x6   :  { %s45_s26 = sshll.u32 %s5137_s25, 4  ;;  %s69_s28 = sshll.u32 %s5138_s27, 4  ;;  %s46_s26 = int_to_ptr.vmem [resolvable:$true] %s45_s26  ;;  %s5230_s28 = int_to_ptr.vmem [resolvable:$true] %s69_s28 }
   0x7   :  { %s4927_s14 = scalar_lea.hbm %s6310_s3, 4096 }
   0x8   :  { %p4928_p0 = scmp.ne.s32.totalorder %s6310_s3, %s4927_s14  ;;  %p4931_p1 = scmp.lt.u32.totalorder %s4927_s14, %s6310_s3 }
   0xa   :  { %p4933_p2 = pnand %p4931_p1, %p4928_p0 }
   0xc   :  { %4936 = shalt.err (!%p4933_p2)
}
   0xd   :  { %s4937_s19 = scalar_lea.vmem %s46_s26, 4096  ;;  %p4942_p4 = scmp.lt.s32.totalorder %s46_s26, %s46_s26 }
   0xe   :  { %p4938_p3 = scmp.ne.s32.totalorder %s46_s26, %s4937_s19  ;;  %p4943_p5 = scmp.lt.s32.totalorder %s4937_s19, %s4937_s19 }
  0x10   :  { %p4944_p6 = por %p4943_p5, %p4942_p4 }
  0x12   :  { %p4945_p7 = pnand %p4944_p6, %p4938_p3 }
  0x14   :  { %4948 = shalt.err (!%p4945_p7)
}
  0x15   :  { %s5139_s20 = smov 128   ;;  %s5140_s21 = smov 8  }
  0x16   :  { %51 = dma.hbm_to_vmem [thread:$0]  %s6310_s3, 4096, %s46_s26, [#allocation6], %s5139_s20, %s5139_s20, %s5140_s21  }
  0x17   :  { %s4949_s27 = scalar_lea.hbm %s6312_s5, 2048 }
  0x18   :  { %p4950_p8 = scmp.ne.s32.totalorder %s6312_s5, %s4949_s27  ;;  %p4953_p9 = scmp.lt.u32.totalorder %s4949_s27, %s6312_s5 }
  0x1a   :  { %p4955_p10 = pnand %p4953_p9, %p4950_p8 }
  0x1c   :  { %4958 = shalt.err (!%p4955_p10)
}
  0x1d   :  { %s4959_s16 = scalar_lea.vmem %s5230_s28, 2048  ;;  %p4964_p12 = scmp.lt.s32.totalorder %s5230_s28, %s5230_s28 }
  0x1e   :  { %p4960_p11 = scmp.ne.s32.totalorder %s5230_s28, %s4959_s16  ;;  %p4965_p13 = scmp.lt.s32.totalorder %s4959_s16, %s4959_s16 }
  0x20   :  { %p4966_p0 = por %p4965_p13, %p4964_p12 }
  0x22   :  { %p4967_p1 = pnand %p4966_p0, %p4960_p11 }
  0x24   :  { %4970 = shalt.err (!%p4967_p1)
}
  0x25   :  { %75 = dma.hbm_to_vmem [thread:$0]  %s6312_s5, 2048, %s5230_s28, [#allocation9], %s5139_s20, %s5139_s20, %s5140_s21  }
  0x26   :  { %s5141_s17 = smov [#allocation11]   ;;  %s5142_s19 = smov [#allocation2]  }
  0x27   :  { %s94_s18 = sshll.u32 %s5141_s17, 4  ;;  %s33_s22 = sshll.u32 %s5142_s19, 4  ;;  %s95_s18 = int_to_ptr.vmem [resolvable:$true] %s94_s18  ;;  %s5267_s22 = int_to_ptr.vmem [resolvable:$true] %s33_s22 }
  0x28   :  { %s4971_s25 = scalar_lea.hbm %s6315_s8, 64 }
  0x29   :  { %p4972_p2 = scmp.ne.s32.totalorder %s6315_s8, %s4971_s25  ;;  %p4975_p3 = scmp.lt.u32.totalorder %s4971_s25, %s6315_s8 }
  0x2b   :  { %p4977_p4 = pnand %p4975_p3, %p4972_p2 }
  0x2d   :  { %4980 = shalt.err (!%p4977_p4)
}
  0x2e   :  { %s4981_s5 = scalar_lea.vmem %s95_s18, 64  ;;  %p4986_p6 = scmp.lt.s32.totalorder %s95_s18, %s95_s18 }
  0x2f   :  { %p4982_p5 = scmp.ne.s32.totalorder %s95_s18, %s4981_s5  ;;  %p4987_p7 = scmp.lt.s32.totalorder %s4981_s5, %s4981_s5 }
  0x31   :  { %p4988_p8 = por %p4987_p7, %p4986_p6 }
  0x33   :  { %p4989_p9 = pnand %p4988_p8, %p4982_p5 }
  0x35   :  { %4992 = shalt.err (!%p4989_p9)
}
  0x36   :  { %97 = dma.hbm_to_vmem [thread:$0]  %s6315_s8, 64, %s95_s18, [#allocation12]  }
  0x37   :  { %s4993_s26 = scalar_lea.hbm %s6309_s2, 512 }
  0x38   :  { %p4994_p10 = scmp.ne.s32.totalorder %s6309_s2, %s4993_s26  ;;  %p4997_p11 = scmp.lt.u32.totalorder %s4993_s26, %s6309_s2 }
  0x3a   :  { %p4999_p12 = pnand %p4997_p11, %p4994_p10 }
  0x3c   :  { %5002 = shalt.err (!%p4999_p12)
}
  0x3d   :  { %s5003_s25 = scalar_lea.vmem %s5267_s22, 512  ;;  %p5008_p0 = scmp.lt.s32.totalorder %s5267_s22, %s5267_s22 }
  0x3e   :  { %p5004_p13 = scmp.ne.s32.totalorder %s5267_s22, %s5003_s25  ;;  %p5009_p1 = scmp.lt.s32.totalorder %s5003_s25, %s5003_s25 }
  0x40   :  { %p5010_p2 = por %p5009_p1, %p5008_p0 }
  0x42   :  { %p5011_p3 = pnand %p5010_p2, %p5004_p13 }
  0x44   :  { %5014 = shalt.err (!%p5011_p3)
}
  0x45   :  { %39 = dma.hbm_to_vmem [thread:$0]  %s6309_s2, 512, %s5267_s22, [#allocation3], %s5139_s20, %s5139_s20, %s5140_s21  }
  0x46   :  { %s5143_s27 = smov [#allocation7]   ;;  %s5144_s30 = smov [#allocation10]  }
  0x47   :  { %s57_s29 = sshll.u32 %s5143_s27, 4  ;;  %s82_s14 = sshll.u32 %s5144_s30, 4  ;;  %s58_s29 = int_to_ptr.vmem [resolvable:$true] %s57_s29  ;;  %s83_s14 = int_to_ptr.vmem [resolvable:$true] %s82_s14 }
  0x48   :  { %s5015_s15 = scalar_lea.hbm %s6311_s4, 4096 }
  0x49   :  { %p5016_p4 = scmp.ne.s32.totalorder %s6311_s4, %s5015_s15  ;;  %p5019_p5 = scmp.lt.u32.totalorder %s5015_s15, %s6311_s4 }
  0x4b   :  { %p5021_p6 = pnand %p5019_p5, %p5016_p4 }
  0x4d   :  { %5024 = shalt.err (!%p5021_p6)
}
  0x4e   :  { %s5025_s2 = scalar_lea.vmem %s58_s29, 4096  ;;  %p5030_p8 = scmp.lt.s32.totalorder %s58_s29, %s58_s29 }
  0x4f   :  { %p5026_p7 = scmp.ne.s32.totalorder %s58_s29, %s5025_s2  ;;  %p5031_p9 = scmp.lt.s32.totalorder %s5025_s2, %s5025_s2 }
  0x51   :  { %p5032_p10 = por %p5031_p9, %p5030_p8 }
  0x53   :  { %p5033_p11 = pnand %p5032_p10, %p5026_p7 }
  0x55   :  { %5036 = shalt.err (!%p5033_p11)
}
  0x56   :  { %63 = dma.hbm_to_vmem [thread:$0]  %s6311_s4, 4096, %s58_s29, [#allocation6], %s5139_s20, %s5139_s20, %s5140_s21  }
  0x57   :  { %s5037_s25 = scalar_lea.hbm %s6313_s6, 16 }
  0x58   :  { %p5038_p12 = scmp.ne.s32.totalorder %s6313_s6, %s5037_s25  ;;  %p5041_p13 = scmp.lt.u32.totalorder %s5037_s25, %s6313_s6 }
  0x5a   :  { %p5043_p0 = pnand %p5041_p13, %p5038_p12 }
  0x5c   :  { %5046 = shalt.err (!%p5043_p0)
}
  0x5d   :  { %s5047_s5 = scalar_lea.vmem %s83_s14, 16  ;;  %s5051_s28 = scalar_lea.vmem %s83_s14, 32 }
  0x5e   :  { %p5048_p1 = scmp.ne.s32.totalorder %s83_s14, %s5047_s5  ;;  %p5052_p2 = scmp.lt.s32.totalorder %s83_s14, %s83_s14 }
  0x5f   :  { %p5053_p3 = scmp.lt.s32.totalorder %s5051_s28, %s5047_s5 }
  0x61   :  { %p5054_p4 = por %p5053_p3, %p5052_p2 }
  0x63   :  { %p5055_p5 = pnand %p5054_p4, %p5048_p1 }
  0x65   :  { %5058 = shalt.err (!%p5055_p5)
}
  0x66   :  { %85 = dma.hbm_to_vmem [thread:$0]  %s6313_s6, 16, %s83_s14, [#allocation9]  }
  0x67   :  { %s5145_s15 = smov [#allocation13]   ;;  %s5146_s3 = smov [#allocation14]  }
  0x68   :  { %s106_s16 = sshll.u32 %s5145_s15, 4  ;;  %s118_s26 = sshll.u32 %s5146_s3, 4  ;;  %s107_s16 = int_to_ptr.vmem [resolvable:$true] %s106_s16  ;;  %s119_s26 = int_to_ptr.vmem [resolvable:$true] %s118_s26 }
  0x69   :  { %s5059_s22 = scalar_lea.hbm %s6317_s10, 32 }
  0x6a   :  { %p5060_p6 = scmp.ne.s32.totalorder %s6317_s10, %s5059_s22  ;;  %p5063_p7 = scmp.lt.u32.totalorder %s5059_s22, %s6317_s10 }
  0x6c   :  { %p5065_p8 = pnand %p5063_p7, %p5060_p6 }
  0x6e   :  { %5068 = shalt.err (!%p5065_p8)
}
  0x6f   :  { %s5069_s6 = scalar_lea.vmem %s107_s16, 32  ;;  %p5074_p10 = scmp.lt.s32.totalorder %s107_s16, %s107_s16 }
  0x70   :  { %p5070_p9 = scmp.ne.s32.totalorder %s107_s16, %s5069_s6  ;;  %p5075_p11 = scmp.lt.s32.totalorder %s5069_s6, %s5069_s6 }
  0x72   :  { %p5076_p12 = por %p5075_p11, %p5074_p10 }
  0x74   :  { %p5077_p13 = pnand %p5076_p12, %p5070_p9 }
  0x76   :  { %5080 = shalt.err (!%p5077_p13)
}
  0x77   :  { %109 = dma.hbm_to_vmem [thread:$0]  %s6317_s10, 32, %s107_s16, [#allocation12]  }
  0x78   :  { %s5081_s30 = scalar_lea.hbm %s6319_s12, 16 }
  0x79   :  { %p5082_p0 = scmp.ne.s32.totalorder %s6319_s12, %s5081_s30  ;;  %p5085_p1 = scmp.lt.u32.totalorder %s5081_s30, %s6319_s12 }
  0x7b   :  { %p5087_p2 = pnand %p5085_p1, %p5082_p0 }
  0x7d   :  { %5090 = shalt.err (!%p5087_p2)
}
  0x7e   :  { %s5091_s15 = scalar_lea.vmem %s119_s26, 16  ;;  %s5095_s3 = scalar_lea.vmem %s119_s26, 32 }
  0x7f   :  { %p5092_p3 = scmp.ne.s32.totalorder %s119_s26, %s5091_s15  ;;  %p5096_p4 = scmp.lt.s32.totalorder %s119_s26, %s119_s26 }
  0x80   :  { %p5097_p5 = scmp.lt.s32.totalorder %s5095_s3, %s5091_s15 }
  0x82   :  { %p5098_p6 = por %p5097_p5, %p5096_p4 }
  0x84   :  { %p5099_p7 = pnand %p5098_p6, %p5092_p3 }
  0x86   :  { %5102 = shalt.err (!%p5099_p7)
}
  0x87   :  { %121 = dma.hbm_to_vmem [thread:$0]  %s6319_s12, 16, %s119_s26, [#allocation15]  }
  0x88   :  { %5125 = dma.done.wait [#allocation3], 512  }
  0x89   :  { %5126 = vsyncadd [#allocation3], 4294966784 }
  0x8a   :  { %5127 = dma.done.wait [#allocation6], 8192  }
  0x8b   :  { %5128 = vsyncadd [#allocation6], 4294959104 }
  0x8c   :  { %5129 = dma.done.wait [#allocation9], 2064  }
  0x8d   :  { %5130 = vsyncadd [#allocation9], 4294965232 }
  0x8e   :  { %5131 = dma.done.wait [#allocation12], 96  }
  0x8f   :  { %5132 = vsyncadd [#allocation12], 4294967200 }
  0x90   :  { %5133 = dma.done.wait [#allocation15], 16  }
  0x91   :  { %5134 = vsyncadd [#allocation15], 4294967280  ;;  %v5147_v0 = vmov 1   ;;  %v5148_v1 = vmov 0   ;;  %v5355_v2 = vld [vmem:[%s6307_s0] sm:$0xff]  ;;  %v302_v4 = vld [vmem:[#allocation2 + $0x8] sm:$0xff]  ;;  %v148_v13 = vlaneseq }
  0x92   :  { %4873 = vset.pattern.permute.xlu0 %v5147_v0  ;;  %4874 = vset.pattern.permute.xlu1 %v5148_v1  ;;  %v301_v3 = vld [vmem:[#allocation2] sm:$0xff]  ;;  %v303_v5 = vld [vmem:[#allocation2 + $0x10] sm:$0xff]  ;;  %v304_v6 = vld [vmem:[#allocation2 + $0x18] sm:$0xff]  ;;  %v5149_v17 = vmov 3   ;;  %v5150_v23 = vmov 0.0|0.0   ;;  %v5151_v26 = vmov 2  }
  0x93   :  { %322 = vperm.xlu0 %4873, %v5355_v2   ;;  %310 = vperm.xlu1 %4874, %v5355_v2   ;;  %v5362_v7 = vld [vmem:[%s6307_s0 + $0x8] sm:$0xff]  ;;  %v5364_v8 = vpack.c.bf16 %v302_v4, %v301_v3  ;;  %v5366_v9 = vpack.c.bf16 %v304_v6, %v303_v5  ;;  %v297_v10 = vld [vmem:[%s6308_s1] sm:$0xff]  ;;  %v5382_v14 = vshrl.u32 %v148_v13, 7  ;;  %v5385_v15 = vand.u32 127, %v148_v13  ;;  %v299_v44 = vld [vmem:[%s6308_s1 + $0x10] sm:$0xff]  ;;  %s5159_s30 = smov [#allocation16]  }
  0x94   :  { %v298_v11 = vld [vmem:[%s6308_s1 + $0x8] sm:$0xff]  ;;  %4300 = vmatprep.subr.bf16.mxu0 %v5150_v23  ;;  %v5152_v30 = vmov 1.0|1.0   ;;  %vm333_vm12 = vcmask 261120   ;;  %v5153_v42 = vmov 0.0   ;;  %v300_v45 = vld [vmem:[%s6308_s1 + $0x18] sm:$0xff] }
  0x95   :  { %4261 = vmatprep.subr.bf16.mxu1 %v5364_v8  ;;  %v5379_v12 = vpack.c.bf16 %v298_v11, %v297_v10  ;;  %v5388_v16 = vadd.s32 8, %v5382_v14  ;;  %v167_v18 = vshrl.u32 %v5382_v14, 2  ;;  %v5392_v19 = vshrl.u32 %v5385_v15, 2  ;;  %v1827_v29 = vld [vmem:[#allocation5 + $0x88] sm:$0xff]  ;;  %s2854_s5 = sshll.u32 %s5159_s30, 4  ;;  %s2855_s5 = int_to_ptr.vmem [resolvable:$true] %s2854_s5 }
  0x96   :  { %4263 = vmatpush3.bf16.msra.mxu1 %v5364_v8  ;;  %v5398_v21 = vadd.s32 16, %v5382_v14  ;;  %v5401_v22 = vadd.s32 24, %v5382_v14  ;;  %v5409_v27 = vadd.s32 32, %v5382_v14  ;;  %v5412_v28 = vadd.s32 40, %v5382_v14  ;;  %p5108_p9 = scmp.lt.s32.totalorder %s2855_s5, %s2855_s5 }
  0x97   :  { %325 = vperm.xlu0 %4873, %v5362_v7   ;;  %313 = vperm.xlu1 %4874, %v5362_v7   ;;  %v168_v20 = vshrl.u32 %v5388_v16, 2  ;;  %vm184_vm0 = vcmp.eq.s32.totalorder %v167_v18, %v5392_v19  ;;  %v5429_v33 = vadd.s32 48, %v5382_v14  ;;  %v5432_v34 = vadd.s32 56, %v5382_v14 }
  0x98   :  { %4265 = vmatprep.subr.bf16.mxu1 %v5366_v9  ;;  %v169_v24 = vshrl.u32 %v5398_v21, 2  ;;  %v170_v25 = vshrl.u32 %v5401_v22, 2  ;;  %v171_v31 = vshrl.u32 %v5409_v27, 2  ;;  %v172_v32 = vshrl.u32 %v5412_v28, 2 }
  0x99   :  { %vm185_vm1 = vcmp.eq.s32.totalorder %v168_v20, %v5392_v19  ;;  %v173_v36 = vshrl.u32 %v5429_v33, 2  ;;  %v174_v37 = vshrl.u32 %v5432_v34, 2  ;;  %v5476_v48 = vpack.c.bf16 %v300_v45, %v299_v44 }
  0x9a   :  { %4267 = vmatpush3.bf16.msra.mxu1 %v5366_v9  ;;  %vm5416_vm2 = vmpackc.low %vm185_vm1, %vm184_vm0  ;;  %vm186_vm3 = vcmp.eq.s32.totalorder %v169_v24, %v5392_v19  ;;  %vm187_vm4 = vcmp.eq.s32.totalorder %v170_v25, %v5392_v19  ;;  %vm188_vm6 = vcmp.eq.s32.totalorder %v171_v31, %v5392_v19  ;;  %vm189_vm7 = vcmp.eq.s32.totalorder %v172_v32, %v5392_v19 }
  0x9b   :  { %4269 = vmatprep.subr.bf16.mxu1 %v5379_v12  ;;  %4875 = vset.pattern.permute.xlu0 %v5149_v17  ;;  %vm5434_vm5 = vmpackc.low %vm187_vm4, %vm186_vm3  ;;  %vm190_vm9 = vcmp.eq.s32.totalorder %v173_v36, %v5392_v19  ;;  %vm191_vm10 = vcmp.eq.s32.totalorder %v174_v37, %v5392_v19  ;;  %v5505_v52 = vadd.s32 64, %v5382_v14  ;;  %v5508_v53 = vadd.s32 72, %v5382_v14 }
  0x9c   :  { %4876 = vset.pattern.permute.xlu1 %v5149_v17  ;;  %698 = vperm.xlu0 %4875, %v5355_v2   ;;  %vm5446_vm8 = vmpackc.low %vm189_vm7, %vm188_vm6  ;;  %v5515_v56 = vadd.s32 80, %v5382_v14  ;;  %v5518_v57 = vadd.s32 88, %v5382_v14  ;;  %v5537_v61 = vadd.s32 96, %v5382_v14  ;;  %v5540_v62 = vadd.s32 104, %v5382_v14 }
  0x9d   :  { %701 = vperm.xlu1 %4876, %v5362_v7   ;;  %4302 = vmatpush3.bf16.msk.msra.mxu0 %vm5416_vm2, %v5152_v30  ;;  %vm5456_vm11 = vmpackc.low %vm191_vm10, %vm190_vm9  ;;  %v175_v54 = vshrl.u32 %v5505_v52, 2  ;;  %v176_v55 = vshrl.u32 %v5508_v53, 2  ;;  %v5559_v3 = vadd.s32 112, %v5382_v14  ;;  %v5562_v4 = vadd.s32 120, %v5382_v14 }
  0x9e   :  { %4303 = vmatprep.subr.bf16.mxu0 %v5150_v23  ;;  %v177_v59 = vshrl.u32 %v5515_v56, 2  ;;  %v178_v60 = vshrl.u32 %v5518_v57, 2  ;;  %v179_v0 = vshrl.u32 %v5537_v61, 2  ;;  %v180_v1 = vshrl.u32 %v5540_v62, 2 }
  0x9f   :  { %vm192_vm1 = vcmp.eq.s32.totalorder %v175_v54, %v5392_v19  ;;  %vm193_vm3 = vcmp.eq.s32.totalorder %v176_v55, %v5392_v19  ;;  %v181_v6 = vshrl.u32 %v5559_v3, 2  ;;  %v182_v10 = vshrl.u32 %v5562_v4, 2 }
  0xa0   :  { %4878 = vset.pattern.permute.xlu0 %v5151_v26  ;;  %vm5520_vm4 = vmpackc.low %vm193_vm3, %vm192_vm1  ;;  %vm194_vm6 = vcmp.eq.s32.totalorder %v177_v59, %v5392_v19  ;;  %vm195_vm7 = vcmp.eq.s32.totalorder %v178_v60, %v5392_v19  ;;  %vm196_vm10 = vcmp.eq.s32.totalorder %v179_v0, %v5392_v19  ;;  %vm5154_vm3 = vmmov 0  }
  0xa1   :  { %4877 = vset.pattern.permute.xlu1 %v5151_v26  ;;  %689 = vperm.xlu0 %4878, %v5362_v7   ;;  %vm5542_vm9 = vmpackc.low %vm195_vm7, %vm194_vm6  ;;  %v5155_v13 = vmov 5   ;;  %v5156_v17 = vmov 4  }
  0xa2   :  { %686 = vperm.xlu1 %4877, %v5355_v2   ;;  %4305 = vmatpush3.bf16.msk.msra.mxu0 %vm5434_vm5, %v5152_v30 }
  0xa3   :  { %4306 = vmatprep.subr.bf16.mxu0 %v5150_v23  ;;  %3596 = vmatprep.mubr.msk.f32.mxu0 %vm5154_vm3, %v5153_v42 }
  0xa5   :  { %4880 = vset.pattern.permute.xlu0 %v5156_v17 }
  0xa6   :  { %4308 = vmatpush3.bf16.msk.msra.mxu0 %vm5446_vm8, %v5152_v30  ;;  %4879 = vset.pattern.permute.xlu1 %v5155_v13  ;;  %v5703_v13 = vsub.s32 0, %v5382_v14 }
  0xa7   :  { %4309 = vmatprep.subr.bf16.mxu0 %v5150_v23  ;;  %1073 = vperm.xlu1 %4879, %v5355_v2  }
  0xa8   :  { %1061 = vperm.xlu0 %4880, %v5355_v2  }
  0xaa   :  { %4311 = vmatpush3.bf16.msk.msra.mxu0 %vm5456_vm11, %v5152_v30 }
  0xab   :  { %4312 = vmatprep.subr.bf16.mxu0 %v5150_v23  ;;  %1076 = vperm.xlu1 %4879, %v5362_v7  }
  0xae   :  { %4314 = vmatpush3.bf16.msk.msra.mxu0 %vm5520_vm4, %v5152_v30 }
  0xaf   :  { %4315 = vmatprep.subr.bf16.mxu0 %v5150_v23  ;;  %4881 = vset.pattern.permute.xlu1 %v5156_v17 }
  0xb0   :  { %1064 = vperm.xlu1 %4881, %v5362_v7  }
  0xb2   :  { %4317 = vmatpush3.bf16.msk.msra.mxu0 %vm5542_vm9, %v5152_v30 }
  0xb3   :  { %4318 = vmatprep.subr.bf16.mxu0 %v5150_v23 }
 0x112   :  { %v323_v40 = vpop.permute.xlu0 %322  ;;  %v311_v41 = vpop.permute.xlu1 %310 }
 0x113   :  { %vm327_vm13 = vcmp.eq.s32.totalorder %v5385_v15, %v323_v40  ;;  %vm315_vm14 = vcmp.eq.s32.totalorder %v5385_v15, %v311_v41 }
 0x114   :  { %v2904_v43 = vsel %vm327_vm13, 1.0, %v5153_v42  ;;  %v2902_v47 = vsel %vm315_vm14, 1.0, %v5153_v42  ;;  %vm197_vm13 = vcmp.eq.s32.totalorder %v180_v1, %v5392_v19 }
 0x115   :  { %3515 = vmatprep.mubr.msk.f32.mxu1 %vm333_vm12, %v2904_v43  ;;  %vm5564_vm14 = vmpackc.low %vm197_vm13, %vm196_vm10 }
 0x116   :  { %v326_v46 = vpop.permute.xlu0 %325  ;;  %v314_v50 = vpop.permute.xlu1 %313  ;;  %4320 = vmatpush3.bf16.msk.msra.mxu0 %vm5564_vm14, %v5152_v30 }
 0x117   :  { %vm328_vm15 = vcmp.eq.s32.totalorder %v5385_v15, %v326_v46  ;;  %vm316_vm0 = vcmp.eq.s32.totalorder %v5385_v15, %v314_v50  ;;  %4321 = vmatprep.subr.bf16.mxu0 %v5150_v23 }
 0x118   :  { %v2905_v49 = vsel %vm328_vm15, 1.0, %v5153_v42  ;;  %v2903_v51 = vsel %vm316_vm0, 1.0, %v5153_v42  ;;  %vm198_vm15 = vcmp.eq.s32.totalorder %v181_v6, %v5392_v19  ;;  %vm199_vm0 = vcmp.eq.s32.totalorder %v182_v10, %v5392_v19 }
 0x119   :  { %3516 = vmatmul.mubr.msk.f32.vlgmr.msra.gmra.mrb[0].mxu1 %vm333_vm12, %v2905_v49  ;;  %vm5580_vm1 = vmpackc.low %vm199_vm0, %vm198_vm15  ;;  %v5157_v6 = vmov 7   ;;  %v5158_v10 = vmov 6  }
 0x11a   :  { %4271 = vmatpush3.bf16.msra.mxu1 %v5379_v12  ;;  %3526 = vmatprep.mubr.msk.f32.mxu1 %vm333_vm12, %v2902_v47 }
 0x11b   :  { %4273 = vmatprep.subr.bf16.mxu1 %v5476_v48  ;;  %4323 = vmatpush3.bf16.msk.msra.mxu0 %vm5580_vm1, %v5152_v30  ;;  %v699_v41 = vpop.permute.xlu0 %698 }
 0x11c   :  { %4340 = vmatprep.subr.bf16.mxu0 %v5150_v23  ;;  %vm703_vm6 = vcmp.eq.s32.totalorder %v5385_v15, %v699_v41  ;;  %v702_v47 = vpop.permute.xlu1 %701  ;;  %4882 = vset.pattern.permute.xlu1 %v5157_v6 }
 0x11d   :  { %vm704_vm7 = vcmp.eq.s32.totalorder %v5385_v15, %v702_v47  ;;  %4883 = vset.pattern.permute.xlu0 %v5157_v6  ;;  %1448 = vperm.xlu1 %4882, %v5355_v2  }
 0x11e   :  { %4275 = vmatpush3.bf16.msra.mxu1 %v5476_v48  ;;  %v2945_v59 = vsel %vm704_vm7, 1.0, %v5153_v42  ;;  %1451 = vperm.xlu0 %4883, %v5362_v7  }
 0x11f   :  { %4276 = vmatprep.subr.bf16.mxu1 %v5150_v23 }
 0x120   :  { %v690_v0 = vpop.permute.xlu0 %689 }
 0x121   :  { %3527 = vmatmul.mubr.msk.f32.vlgmr.msra.gmra.mrb[0].mxu1 %vm333_vm12, %v2903_v51  ;;  %v2944_v51 = vsel %vm703_vm6, 1.0, %v5153_v42  ;;  %v687_v55 = vpop.permute.xlu1 %686  ;;  %vm692_vm13 = vcmp.eq.s32.totalorder %v5385_v15, %v690_v0  ;;  %4884 = vset.pattern.permute.xlu1 %v5158_v10 }
 0x122   :  { %4278 = vmatpush3.bf16.msk.msra.mxu1 %vm5416_vm2, %v5152_v30  ;;  %3561 = vmatprep.mubr.msk.f32.mxu1 %vm5154_vm3, %v5153_v42  ;;  %vm691_vm10 = vcmp.eq.s32.totalorder %v5385_v15, %v687_v55  ;;  %v2943_v1 = vsel %vm692_vm13, 1.0, %v5153_v42 }
 0x123   :  { %4279 = vmatprep.subr.bf16.mxu1 %v5150_v23  ;;  %v2942_v60 = vsel %vm691_vm10, 1.0, %v5153_v42  ;;  %1436 = vperm.xlu1 %4884, %v5355_v2  }
 0x126   :  { %4281 = vmatpush3.bf16.msk.msra.mxu1 %vm5434_vm5, %v5152_v30  ;;  %v1074_v10 = vpop.permute.xlu1 %1073 }
 0x127   :  { %4282 = vmatprep.subr.bf16.mxu1 %v5150_v23  ;;  %1439 = vperm.xlu1 %4884, %v5362_v7   ;;  %vm1078_vm15 = vcmp.eq.s32.totalorder %v5385_v15, %v1074_v10 }
 0x12a   :  { %4284 = vmatpush3.bf16.msk.msra.mxu1 %vm5446_vm8, %v5152_v30 }
 0x12b   :  { %4285 = vmatprep.subr.bf16.mxu1 %v5150_v23 }
 0x12e   :  { %4287 = vmatpush3.bf16.msk.msra.mxu1 %vm5456_vm11, %v5152_v30 }
 0x12f   :  { %4288 = vmatprep.subr.bf16.mxu1 %v5150_v23 }
 0x132   :  { %4290 = vmatpush3.bf16.msk.msra.mxu1 %vm5520_vm4, %v5152_v30 }
 0x133   :  { %4291 = vmatprep.subr.bf16.mxu1 %v5150_v23 }
 0x136   :  { %4293 = vmatpush3.bf16.msk.msra.mxu1 %vm5542_vm9, %v5152_v30 }
 0x137   :  { %4294 = vmatprep.subr.bf16.mxu1 %v5150_v23 }
 0x13a   :  { %4296 = vmatpush3.bf16.msk.msra.mxu1 %vm5564_vm14, %v5152_v30 }
 0x13b   :  { %4297 = vmatprep.subr.bf16.mxu1 %v5150_v23 }
 0x13e   :  { %4299 = vmatpush3.bf16.msk.msra.mxu1 %vm5580_vm1, %v5152_v30 }
 0x13f   :  { %4325 = vmatprep.subr.bf16.mxu1 %v5364_v8 }
 0x1f4   :  { %v5600_v18 = vpop.f32.mrb[0].mxu1 }
 0x1f5   :  { %v504_v19 = vmul.f32 %v5600_v18, %v5600_v18  ;;  %v5604_v20 = vpop.f32.mrb[1].mxu1 }
 0x1f6   :  { %v496_v24 = vadd.f32 %v5600_v18, %v5604_v20  ;;  %v503_v25 = vmul.f32 %v5604_v20, %v5604_v20 }
 0x1f8   :  { %v497_v26 = vrot.slane %v496_v24, 4  ;;  %v505_v31 = vadd.f32 %v504_v19, %v503_v25 }
 0x1fa   :  { %v498_v32 = vadd.f32 %v497_v26, %v496_v24  ;;  %v506_v36 = vrot.slane %v505_v31, 4 }
 0x1fc   :  { %v499_v37 = vrot.slane %v498_v32, 2  ;;  %v507_v40 = vadd.f32 %v506_v36, %v505_v31 }
 0x1fe   :  { %v500_v43 = vadd.f32 %v499_v37, %v498_v32  ;;  %v508_v44 = vrot.slane %v507_v40, 2 }
 0x200   :  { %v501_v45 = vrot.slane %v500_v43, 1  ;;  %v509_v46 = vadd.f32 %v508_v44, %v507_v40 }
 0x202   :  { %v502_v49 = vadd.f32 %v501_v45, %v500_v43  ;;  %v510_v50 = vrot.slane %v509_v46, 1 }
 0x204   :  { %3562 = vmatmul.mubr.f32.vlgmr.msra.gmra.mrb[2].mxu1 %v502_v49  ;;  %v511_v54 = vadd.f32 %v510_v50, %v509_v46 }
 0x205   :  { %4327 = vmatpush3.bf16.msra.mxu1 %v5364_v8  ;;  %3607 = vmatprep.mubr.msk.f32.mxu1 %vm333_vm12, %v2944_v51 }
 0x206   :  { %3597 = vmatmul.mubr.f32.vlgmr.msra.gmra.mrb[0].mxu0 %v511_v54  ;;  %4329 = vmatprep.subr.bf16.mxu1 %v5366_v9 }
 0x207   :  { %4342 = vmatpush3.bf16.msk.msra.mxu0 %vm5416_vm2, %v5152_v30  ;;  %3653 = vmatprep.mubr.msk.f32.mxu0 %vm5154_vm3, %v5153_v42 }
 0x208   :  { %4343 = vmatprep.subr.bf16.mxu0 %v5150_v23 }
 0x209   :  { %4331 = vmatpush3.bf16.msra.mxu1 %v5366_v9 }
 0x20a   :  { %4333 = vmatprep.subr.bf16.mxu1 %v5379_v12 }
 0x20b   :  { %4345 = vmatpush3.bf16.msk.msra.mxu0 %vm5434_vm5, %v5152_v30 }
 0x20c   :  { %3608 = vmatmul.mubr.msk.f32.vlgmr.msra.gmra.mrb[4].mxu1 %vm333_vm12, %v2945_v59  ;;  %4346 = vmatprep.subr.bf16.mxu0 %v5150_v23 }
 0x20d   :  { %4335 = vmatpush3.bf16.msra.mxu1 %v5379_v12  ;;  %3618 = vmatprep.mubr.msk.f32.mxu1 %vm333_vm12, %v2942_v60 }
 0x20e   :  { %4337 = vmatprep.subr.bf16.mxu1 %v5476_v48 }
 0x20f   :  { %4348 = vmatpush3.bf16.msk.msra.mxu0 %vm5446_vm8, %v5152_v30 }
 0x210   :  { %4349 = vmatprep.subr.bf16.mxu0 %v5150_v23 }
 0x211   :  { %4339 = vmatpush3.bf16.msra.mxu1 %v5476_v48 }
 0x212   :  { %4364 = vmatprep.subr.bf16.mxu1 %v5150_v23 }
 0x213   :  { %4351 = vmatpush3.bf16.msk.msra.mxu0 %vm5456_vm11, %v5152_v30 }
 0x214   :  { %3619 = vmatmul.mubr.msk.f32.vlgmr.msra.gmra.mrb[4].mxu1 %vm333_vm12, %v2943_v1  ;;  %4352 = vmatprep.subr.bf16.mxu0 %v5150_v23 }
 0x215   :  { %4366 = vmatpush3.bf16.msk.msra.mxu1 %vm5416_vm2, %v5152_v30  ;;  %3688 = vmatprep.mubr.msk.f32.mxu1 %vm5154_vm3, %v5153_v42 }
 0x216   :  { %4367 = vmatprep.subr.bf16.mxu1 %v5150_v23 }
 0x217   :  { %4354 = vmatpush3.bf16.msk.msra.mxu0 %vm5520_vm4, %v5152_v30 }
 0x218   :  { %4355 = vmatprep.subr.bf16.mxu0 %v5150_v23 }
 0x219   :  { %4369 = vmatpush3.bf16.msk.msra.mxu1 %vm5434_vm5, %v5152_v30 }
 0x21a   :  { %4370 = vmatprep.subr.bf16.mxu1 %v5150_v23 }
 0x21b   :  { %4357 = vmatpush3.bf16.msk.msra.mxu0 %vm5542_vm9, %v5152_v30 }
 0x21c   :  { %4358 = vmatprep.subr.bf16.mxu0 %v5150_v23 }
 0x21d   :  { %4372 = vmatpush3.bf16.msk.msra.mxu1 %vm5446_vm8, %v5152_v30 }
 0x21e   :  { %4373 = vmatprep.subr.bf16.mxu1 %v5150_v23 }
 0x21f   :  { %4360 = vmatpush3.bf16.msk.msra.mxu0 %vm5564_vm14, %v5152_v30 }
 0x220   :  { %4361 = vmatprep.subr.bf16.mxu0 %v5150_v23 }
 0x221   :  { %4375 = vmatpush3.bf16.msk.msra.mxu1 %vm5456_vm11, %v5152_v30 }
 0x222   :  { %4376 = vmatprep.subr.bf16.mxu1 %v5150_v23 }
 0x223   :  { %4363 = vmatpush3.bf16.msk.msra.mxu0 %vm5580_vm1, %v5152_v30 }
 0x224   :  { %4389 = vmatprep.subr.bf16.mxu0 %v5364_v8 }
 0x225   :  { %4378 = vmatpush3.bf16.msk.msra.mxu1 %vm5520_vm4, %v5152_v30 }
 0x226   :  { %4379 = vmatprep.subr.bf16.mxu1 %v5150_v23 }
 0x229   :  { %4381 = vmatpush3.bf16.msk.msra.mxu1 %vm5542_vm9, %v5152_v30 }
 0x22a   :  { %4382 = vmatprep.subr.bf16.mxu1 %v5150_v23 }
 0x22d   :  { %4384 = vmatpush3.bf16.msk.msra.mxu1 %vm5564_vm14, %v5152_v30 }
 0x22e   :  { %4385 = vmatprep.subr.bf16.mxu1 %v5150_v23 }
 0x231   :  { %4387 = vmatpush3.bf16.msk.msra.mxu1 %vm5580_vm1, %v5152_v30 }
 0x232   :  { %4404 = vmatprep.subr.bf16.mxu1 %v5150_v23 }
 0x2d7   :  { %v578_v17 = vpop.f32.mrb[2].mxu1 }
 0x2d8   :  { %v652_v19 = vmul.f32 0.015625, %v578_v17  ;;  %v3563_v24 = vpop.f32.mrb[3].mxu1 }
 0x2d9   :  { %v648_v25 = vpop.f32.mrb[0].mxu0  ;;  %v2984_v24 = vsel %vm1078_vm15, 1.0, %v5153_v42 }
 0x2da   :  { %v654_v26 = vmul.f32 %v652_v19, %v652_v19  ;;  %v660_v31 = vrot.slane %v652_v19, %v5703_v13  ;;  %v653_v32 = vmul.f32 0.015625, %v648_v25  ;;  %v3598_v36 = vpop.f32.mrb[1].mxu0 }
 0x2db   :  { %v1077_v36 = vpop.permute.xlu1 %1076 }
 0x2dc   :  { %v661_v37 = vsub.f32 %v5604_v20, %v660_v31  ;;  %v662_v40 = vsub.f32 %v5600_v18, %v660_v31  ;;  %v655_v41 = vsub.f32 %v653_v32, %v654_v26  ;;  %v1062_v32 = vpop.permute.xlu0 %1061  ;;  %vm1079_vm6 = vcmp.eq.s32.totalorder %v5385_v15, %v1077_v36 }
 0x2dd   :  { %vm1066_vm0 = vcmp.eq.s32.totalorder %v5385_v15, %v1062_v32 }
 0x2de   :  { %v656_v2 = vmax.f32 %v655_v41, 0.0 }
 0x2df   :  { %v1065_v41 = vpop.permute.xlu1 %1064 }
 0x2e0   :  { %v663_v43 = vadd.f32 1e-05, %v656_v2  ;;  %vm1067_vm7 = vcmp.eq.s32.totalorder %v5385_v15, %v1065_v41 }
 0x2e1   :  { %v2983_v2 = vsel %vm1067_vm7, 1.0, %v5153_v42 }
 0x2e2   :  { %4885 = vrsqrt.f32 %v663_v43 }
 0x2e7   :  { %v5708_v7 = vpop.f32.mrb[4].mxu1 }
 0x2e8   :  { %v879_v44 = vmul.f32 %v5708_v7, %v5708_v7  ;;  %v5712_v45 = vpop.f32.mrb[5].mxu1 }
 0x2e9   :  { %v871_v46 = vadd.f32 %v5708_v7, %v5712_v45  ;;  %v878_v47 = vmul.f32 %v5712_v45, %v5712_v45 }
 0x2eb   :  { %v872_v20 = vrot.slane %v871_v46, 4  ;;  %v880_v49 = vadd.f32 %v879_v44, %v878_v47 }
 0x2ec   :  { %v4886_v18 = vpop.eup %4885 }
 0x2ed   :  { %v668_v50 = vrot.slane %v4886_v18, %v5703_v13  ;;  %v873_v51 = vadd.f32 %v872_v20, %v871_v46  ;;  %v881_v54 = vrot.slane %v880_v49, 4 }
 0x2ef   :  { %v5719_v55 = vmul.f32 %v668_v50, %v661_v37  ;;  %v5721_v59 = vmul.f32 %v668_v50, %v662_v40  ;;  %v874_v60 = vrot.slane %v873_v51, 2  ;;  %v882_v0 = vadd.f32 %v881_v54, %v880_v49 }
 0x2f0   :  { %v2982_v37 = vsel %vm1066_vm0, 1.0, %v5153_v42  ;;  %v2985_v40 = vsel %vm1079_vm6, 1.0, %v5153_v42 }
 0x2f1   :  { %v875_v1 = vadd.f32 %v874_v60, %v873_v51  ;;  %v883_v6 = vrot.slane %v882_v0, 2 }
 0x2f3   :  { %v876_v17 = vrot.slane %v875_v1, 1  ;;  %v884_v19 = vadd.f32 %v883_v6, %v882_v0 }
 0x2f5   :  { %v877_v25 = vadd.f32 %v876_v17, %v875_v1  ;;  %v885_v26 = vrot.slane %v884_v19, 1 }
 0x2f7   :  { %3654 = vmatmul.mubr.f32.vlgmr.msra.gmra.mrb[2].mxu0 %v877_v25  ;;  %v886_v31 = vadd.f32 %v885_v26, %v884_v19 }
 0x2f8   :  { %4391 = vmatpush3.bf16.msra.mxu0 %v5364_v8  ;;  %3699 = vmatprep.mubr.msk.f32.mxu0 %vm333_vm12, %v2984_v24 }
 0x2f9   :  { %3689 = vmatmul.mubr.f32.vlgmr.msra.gmra.mrb[6].mxu1 %v886_v31  ;;  %4393 = vmatprep.subr.bf16.mxu0 %v5366_v9 }
 0x2fa   :  { %4406 = vmatpush3.bf16.msk.msra.mxu1 %vm5416_vm2, %v5152_v30  ;;  %3745 = vmatprep.mubr.msk.f32.mxu1 %vm5154_vm3, %v5153_v42 }
 0x2fb   :  { %4407 = vmatprep.subr.bf16.mxu1 %v5150_v23 }
 0x2fc   :  { %4395 = vmatpush3.bf16.msra.mxu0 %v5366_v9 }
 0x2fd   :  { %4397 = vmatprep.subr.bf16.mxu0 %v5379_v12 }
 0x2fe   :  { %4409 = vmatpush3.bf16.msk.msra.mxu1 %vm5434_vm5, %v5152_v30 }
 0x2ff   :  { %3700 = vmatmul.mubr.msk.f32.vlgmr.msra.gmra.mrb[4].mxu0 %vm333_vm12, %v2985_v40  ;;  %4410 = vmatprep.subr.bf16.mxu1 %v5150_v23 }
 0x300   :  { %4399 = vmatpush3.bf16.msra.mxu0 %v5379_v12  ;;  %3710 = vmatprep.mubr.msk.f32.mxu0 %vm333_vm12, %v2982_v37 }
 0x301   :  { %4401 = vmatprep.subr.bf16.mxu0 %v5476_v48 }
 0x302   :  { %4412 = vmatpush3.bf16.msk.msra.mxu1 %vm5446_vm8, %v5152_v30 }
 0x303   :  { %4413 = vmatprep.subr.bf16.mxu1 %v5150_v23 }
 0x304   :  { %4403 = vmatpush3.bf16.msra.mxu0 %v5476_v48 }
 0x305   :  { %4428 = vmatprep.subr.bf16.mxu0 %v5150_v23 }
 0x306   :  { %4415 = vmatpush3.bf16.msk.msra.mxu1 %vm5456_vm11, %v5152_v30 }
 0x307   :  { %3711 = vmatmul.mubr.msk.f32.vlgmr.msra.gmra.mrb[4].mxu0 %vm333_vm12, %v2983_v2  ;;  %4416 = vmatprep.subr.bf16.mxu1 %v5150_v23 }
 0x308   :  { %4430 = vmatpush3.bf16.msk.msra.mxu0 %vm5416_vm2, %v5152_v30  ;;  %3780 = vmatprep.mubr.msk.f32.mxu0 %vm5154_vm3, %v5153_v42 }
 0x309   :  { %4431 = vmatprep.subr.bf16.mxu0 %v5150_v23 }
 0x30a   :  { %4418 = vmatpush3.bf16.msk.msra.mxu1 %vm5520_vm4, %v5152_v30 }
 0x30b   :  { %4419 = vmatprep.subr.bf16.mxu1 %v5150_v23 }
 0x30c   :  { %4433 = vmatpush3.bf16.msk.msra.mxu0 %vm5434_vm5, %v5152_v30 }
 0x30d   :  { %4434 = vmatprep.subr.bf16.mxu0 %v5150_v23 }
 0x30e   :  { %4421 = vmatpush3.bf16.msk.msra.mxu1 %vm5542_vm9, %v5152_v30 }
 0x30f   :  { %4422 = vmatprep.subr.bf16.mxu1 %v5150_v23 }
 0x310   :  { %4436 = vmatpush3.bf16.msk.msra.mxu0 %vm5446_vm8, %v5152_v30 }
 0x311   :  { %4437 = vmatprep.subr.bf16.mxu0 %v5150_v23 }
 0x312   :  { %4424 = vmatpush3.bf16.msk.msra.mxu1 %vm5564_vm14, %v5152_v30 }
 0x313   :  { %4425 = vmatprep.subr.bf16.mxu1 %v5150_v23 }
 0x314   :  { %4439 = vmatpush3.bf16.msk.msra.mxu0 %vm5456_vm11, %v5152_v30 }
 0x315   :  { %4440 = vmatprep.subr.bf16.mxu0 %v5150_v23 }
 0x316   :  { %4427 = vmatpush3.bf16.msk.msra.mxu1 %vm5580_vm1, %v5152_v30 }
 0x317   :  { %4453 = vmatprep.subr.bf16.mxu1 %v5364_v8 }
 0x318   :  { %4442 = vmatpush3.bf16.msk.msra.mxu0 %vm5520_vm4, %v5152_v30 }
 0x319   :  { %4443 = vmatprep.subr.bf16.mxu0 %v5150_v23 }
 0x31c   :  { %4445 = vmatpush3.bf16.msk.msra.mxu0 %vm5542_vm9, %v5152_v30 }
 0x31d   :  { %4446 = vmatprep.subr.bf16.mxu0 %v5150_v23 }
 0x320   :  { %4448 = vmatpush3.bf16.msk.msra.mxu0 %vm5564_vm14, %v5152_v30 }
 0x321   :  { %4449 = vmatprep.subr.bf16.mxu0 %v5150_v23 }
 0x324   :  { %4451 = vmatpush3.bf16.msk.msra.mxu0 %vm5580_vm1, %v5152_v30 }
 0x325   :  { %4468 = vmatprep.subr.bf16.mxu0 %v5150_v23 }
 0x3ca   :  { %v953_v43 = vpop.f32.mrb[2].mxu0 }
 0x3cb   :  { %v1027_v44 = vmul.f32 0.015625, %v953_v43  ;;  %v3655_v46 = vpop.f32.mrb[3].mxu0 }
 0x3cc   :  { %v1023_v47 = vpop.f32.mrb[6].mxu1 }
 0x3cd   :  { %v1029_v20 = vmul.f32 %v1027_v44, %v1027_v44  ;;  %v1035_v49 = vrot.slane %v1027_v44, %v5703_v13  ;;  %v1028_v18 = vmul.f32 0.015625, %v1023_v47  ;;  %v3690_v50 = vpop.f32.mrb[7].mxu1  ;;  %v1449_v44 = vpop.permute.xlu1 %1448 }
 0x3ce   :  { %vm1453_vm10 = vcmp.eq.s32.totalorder %v5385_v15, %v1449_v44  ;;  %v1452_v50 = vpop.permute.xlu0 %1451 }
 0x3cf   :  { %v1036_v51 = vsub.f32 %v5712_v45, %v1035_v49  ;;  %v1037_v54 = vsub.f32 %v5708_v7, %v1035_v49  ;;  %v1030_v60 = vsub.f32 %v1028_v18, %v1029_v20  ;;  %v3024_v49 = vsel %vm1453_vm10, 1.0, %v5153_v42 }
 0x3d0   :  { %vm1454_vm13 = vcmp.eq.s32.totalorder %v5385_v15, %v1452_v50 }
 0x3d1   :  { %v1031_v0 = vmax.f32 %v1030_v60, 0.0 }
 0x3d3   :  { %v1038_v1 = vadd.f32 1e-05, %v1031_v0 }
 0x3d5   :  { %4887 = vrsqrt.f32 %v1038_v1 }
 0x3da   :  { %v5814_v6 = vpop.f32.mrb[4].mxu0 }
 0x3db   :  { %v1254_v10 = vmul.f32 %v5814_v6, %v5814_v6  ;;  %v5818_v17 = vpop.f32.mrb[5].mxu0 }
 0x3dc   :  { %v1246_v19 = vadd.f32 %v5814_v6, %v5818_v17  ;;  %v1253_v24 = vmul.f32 %v5818_v17, %v5818_v17 }
 0x3de   :  { %v1247_v45 = vrot.slane %v1246_v19, 4  ;;  %v1255_v25 = vadd.f32 %v1254_v10, %v1253_v24 }
 0x3df   :  { %v4888_v7 = vpop.eup %4887 }
 0x3e0   :  { %v1043_v26 = vrot.slane %v4888_v7, %v5703_v13  ;;  %v1248_v31 = vadd.f32 %v1247_v45, %v1246_v19  ;;  %v1256_v32 = vrot.slane %v1255_v25, 4  ;;  %v5923_v45 = vsub.s32 1, %v5382_v14  ;;  %v5928_v7 = vld [vmem:[%s6314_s7] sm:$0xf] }
 0x3e2   :  { %v5825_v36 = vmul.f32 %v1043_v26, %v1036_v51  ;;  %v5827_v37 = vmul.f32 %v1043_v26, %v1037_v54  ;;  %v1249_v40 = vrot.slane %v1248_v31, 2  ;;  %v1257_v41 = vadd.f32 %v1256_v32, %v1255_v25  ;;  %v1437_v51 = vpop.permute.xlu1 %1436  ;;  %v5932_v32 = vld [vmem:[#allocation11] sm:$0xf] }
 0x3e3   :  { %vm1441_vm15 = vcmp.eq.s32.totalorder %v5385_v15, %v1437_v51 }
 0x3e4   :  { %v1250_v2 = vadd.f32 %v1249_v40, %v1248_v31  ;;  %v1258_v43 = vrot.slane %v1257_v41, 2  ;;  %v3022_v54 = vsel %vm1441_vm15, 1.0, %v5153_v42  ;;  %v1049_v31 = vrot.slane %v5928_v7, %v5923_v45 }
 0x3e6   :  { %v1251_v46 = vrot.slane %v1250_v2, 1  ;;  %v1259_v47 = vadd.f32 %v1258_v43, %v1257_v41  ;;  %v1440_v0 = vpop.permute.xlu1 %1439 }
 0x3e7   :  { %vm1442_vm0 = vcmp.eq.s32.totalorder %v5385_v15, %v1440_v0 }
 0x3e8   :  { %v1252_v20 = vadd.f32 %v1251_v46, %v1250_v2  ;;  %v1260_v18 = vrot.slane %v1259_v47, 1 }
 0x3ea   :  { %3746 = vmatmul.mubr.f32.vlgmr.msra.gmra.mrb[8].mxu1 %v1252_v20  ;;  %v1261_v60 = vadd.f32 %v1260_v18, %v1259_v47 }
 0x3eb   :  { %4455 = vmatpush3.bf16.msra.mxu1 %v5364_v8  ;;  %3791 = vmatprep.mubr.msk.f32.mxu1 %vm333_vm12, %v3024_v49  ;;  %v3025_v8 = vsel %vm1454_vm13, 1.0, %v5153_v42 }
 0x3ec   :  { %3781 = vmatmul.mubr.f32.vlgmr.msra.gmra.mrb[6].mxu0 %v1261_v60  ;;  %4457 = vmatprep.subr.bf16.mxu1 %v5366_v9 }
 0x3ed   :  { %4470 = vmatpush3.bf16.msk.msra.mxu0 %vm5416_vm2, %v5152_v30  ;;  %3837 = vmatprep.mubr.msk.f32.mxu0 %vm5154_vm3, %v5153_v42 }
 0x3ee   :  { %4471 = vmatprep.subr.bf16.mxu0 %v5150_v23 }
 0x3ef   :  { %4459 = vmatpush3.bf16.msra.mxu1 %v5366_v9  ;;  %v3023_v9 = vsel %vm1442_vm0, 1.0, %v5153_v42 }
 0x3f0   :  { %4461 = vmatprep.subr.bf16.mxu1 %v5379_v12 }
 0x3f1   :  { %4473 = vmatpush3.bf16.msk.msra.mxu0 %vm5434_vm5, %v5152_v30 }
 0x3f2   :  { %3792 = vmatmul.mubr.msk.f32.vlgmr.msra.gmra.mrb[10].mxu1 %vm333_vm12, %v3025_v8  ;;  %4474 = vmatprep.subr.bf16.mxu0 %v5150_v23 }
 0x3f3   :  { %4463 = vmatpush3.bf16.msra.mxu1 %v5379_v12  ;;  %3802 = vmatprep.mubr.msk.f32.mxu1 %vm333_vm12, %v3022_v54  ;;  %v1826_v12 = vld [vmem:[#allocation5 + $0x80] sm:$0xff] }
 0x3f4   :  { %4465 = vmatprep.subr.bf16.mxu1 %v5476_v48  ;;  %v5916_v35 = vpack.c.bf16 %v1827_v29, %v1826_v12  ;;  %v1828_v12 = vld [vmem:[#allocation5 + $0x90] sm:$0xff]  ;;  %v1829_v29 = vld [vmem:[#allocation5 + $0x98] sm:$0xff] }
 0x3f5   :  { %4476 = vmatpush3.bf16.msk.msra.mxu0 %vm5446_vm8, %v5152_v30 }
 0x3f6   :  { %4477 = vmatprep.subr.bf16.mxu0 %v5150_v23 }
 0x3f7   :  { %4467 = vmatpush3.bf16.msra.mxu1 %v5476_v48 }
 0x3f8   :  { %4492 = vmatprep.subr.bf16.mxu1 %v5150_v23 }
 0x3f9   :  { %4479 = vmatpush3.bf16.msk.msra.mxu0 %vm5456_vm11, %v5152_v30 }
 0x3fa   :  { %3803 = vmatmul.mubr.msk.f32.vlgmr.msra.gmra.mrb[10].mxu1 %vm333_vm12, %v3023_v9  ;;  %4480 = vmatprep.subr.bf16.mxu0 %v5150_v23 }
 0x3fb   :  { %4494 = vmatpush3.bf16.msk.msra.mxu1 %vm5416_vm2, %v5152_v30  ;;  %3872 = vmatprep.mubr.msk.f32.mxu1 %vm5154_vm3, %v5153_v42 }
 0x3fc   :  { %4495 = vmatprep.subr.bf16.mxu1 %v5150_v23 }
 0x3fd   :  { %4482 = vmatpush3.bf16.msk.msra.mxu0 %vm5520_vm4, %v5152_v30 }
 0x3fe   :  { %4483 = vmatprep.subr.bf16.mxu0 %v5150_v23 }
 0x3ff   :  { %4497 = vmatpush3.bf16.msk.msra.mxu1 %vm5434_vm5, %v5152_v30 }
 0x400   :  { %4498 = vmatprep.subr.bf16.mxu1 %v5150_v23 }
 0x401   :  { %4485 = vmatpush3.bf16.msk.msra.mxu0 %vm5542_vm9, %v5152_v30 }
 0x402   :  { %4486 = vmatprep.subr.bf16.mxu0 %v5150_v23 }
 0x403   :  { %4500 = vmatpush3.bf16.msk.msra.mxu1 %vm5446_vm8, %v5152_v30 }
 0x404   :  { %4501 = vmatprep.subr.bf16.mxu1 %v5150_v23 }
 0x405   :  { %4488 = vmatpush3.bf16.msk.msra.mxu0 %vm5564_vm14, %v5152_v30 }
 0x406   :  { %4489 = vmatprep.subr.bf16.mxu0 %v5150_v23 }
 0x407   :  { %4503 = vmatpush3.bf16.msk.msra.mxu1 %vm5456_vm11, %v5152_v30 }
 0x408   :  { %4504 = vmatprep.subr.bf16.mxu1 %v5150_v23 }
 0x409   :  { %4491 = vmatpush3.bf16.msk.msra.mxu0 %vm5580_vm1, %v5152_v30 }
 0x40a   :  { %4517 = vmatprep.subr.bf16.mxu0 %v5916_v35 }
 0x40b   :  { %4506 = vmatpush3.bf16.msk.msra.mxu1 %vm5520_vm4, %v5152_v30 }
 0x40c   :  { %4507 = vmatprep.subr.bf16.mxu1 %v5150_v23 }
 0x40f   :  { %4509 = vmatpush3.bf16.msk.msra.mxu1 %vm5542_vm9, %v5152_v30 }
 0x410   :  { %4510 = vmatprep.subr.bf16.mxu1 %v5150_v23 }
 0x413   :  { %4512 = vmatpush3.bf16.msk.msra.mxu1 %vm5564_vm14, %v5152_v30 }
 0x414   :  { %4513 = vmatprep.subr.bf16.mxu1 %v5150_v23 }
 0x417   :  { %4515 = vmatpush3.bf16.msk.msra.mxu1 %vm5580_vm1, %v5152_v30 }
 0x418   :  { %4580 = vmatprep.subr.bf16.mxu1 %v5150_v23 }
 0x4bd   :  { %v1328_v38 = vpop.f32.mrb[8].mxu1 }
 0x4be   :  { %v1402_v39 = vmul.f32 0.015625, %v1328_v38  ;;  %v3747_v48 = vpop.f32.mrb[9].mxu1 }
 0x4bf   :  { %v1398_v58 = vpop.f32.mrb[6].mxu0 }
 0x4c0   :  { %v1404_v63 = vmul.f32 %v1402_v39, %v1402_v39  ;;  %v1410_v5 = vrot.slane %v1402_v39, %v5703_v13  ;;  %v1403_v1 = vmul.f32 0.015625, %v1398_v58  ;;  %v3782_v10 = vpop.f32.mrb[7].mxu0 }
 0x4c2   :  { %v1411_v11 = vsub.f32 %v5818_v17, %v1410_v5  ;;  %v1412_v19 = vsub.f32 %v5814_v6, %v1410_v5  ;;  %v1405_v24 = vsub.f32 %v1403_v1, %v1404_v63  ;;  %v1050_v17 = vmul.f32 %v1049_v31, %v5825_v36  ;;  %v1830_v5 = vld [vmem:[#allocation5 + $0xa0] sm:$0xff]  ;;  %v1831_v1 = vld [vmem:[#allocation5 + $0xa8] sm:$0xff] }
 0x4c3   :  { %v1055_v6 = vrot.slane %v5932_v32, %v5923_v45  ;;  %v5952_v63 = vpack.c.bf16 %v1829_v29, %v1828_v12  ;;  %v1810_v12 = vld [vmem:[#allocation5] sm:$0xff]  ;;  %v1811_v29 = vld [vmem:[#allocation5 + $0x8] sm:$0xff] }
 0x4c4   :  { %v1406_v25 = vmax.f32 %v1405_v24, 0.0  ;;  %v1832_v24 = vld [vmem:[#allocation5 + $0xb0] sm:$0xff] }
 0x4c5   :  { %v1056_v43 = vadd.f32 %v1055_v6, %v1050_v17  ;;  %v1834_v17 = vld [vmem:[#allocation5 + $0xc0] sm:$0xff] }
 0x4c6   :  { %v1413_v26 = vadd.f32 1e-05, %v1406_v25  ;;  %v1833_v25 = vld [vmem:[#allocation5 + $0xb8] sm:$0xff] }
 0x4c8   :  { %4889 = vrsqrt.f32 %v1413_v26  ;;  %v5962_v26 = vpack.c.bf16 %v1833_v25, %v1832_v24  ;;  %v1816_v24 = vld [vmem:[#allocation5 + $0x30] sm:$0xff]  ;;  %v1817_v25 = vld [vmem:[#allocation5 + $0x38] sm:$0xff] }
 0x4c9   :  { %4891 = vtanh.f32 %v1056_v43  ;;  %v674_v43 = vrot.slane %v5928_v7, %v5703_v13 }
 0x4cd   :  { %v5937_v40 = vpop.f32.mrb[10].mxu1 }
 0x4ce   :  { %v1629_v41 = vmul.f32 %v5937_v40, %v5937_v40  ;;  %v5941_v2 = vpop.f32.mrb[11].mxu1 }
 0x4cf   :  { %v1621_v44 = vadd.f32 %v5937_v40, %v5941_v2  ;;  %v1628_v46 = vmul.f32 %v5941_v2, %v5941_v2 }
 0x4d1   :  { %v1622_v47 = vrot.slane %v1621_v44, 4  ;;  %v1630_v20 = vadd.f32 %v1629_v41, %v1628_v46  ;;  %v1835_v41 = vld [vmem:[#allocation5 + $0xc8] sm:$0xff]  ;;  %v1836_v46 = vld [vmem:[#allocation5 + $0xd0] sm:$0xff] }
 0x4d2   :  { %v4890_v36 = vpop.eup %4889 }
 0x4d3   :  { %v1418_v49 = vrot.slane %v4890_v36, %v5703_v13  ;;  %v1623_v18 = vadd.f32 %v1622_v47, %v1621_v44  ;;  %v1631_v50 = vrot.slane %v1630_v20, 4  ;;  %v4892_v10 = vpop.eup %4891  ;;  %v5968_v44 = vpack.c.bf16 %v1835_v41, %v1834_v17  ;;  %v1837_v47 = vld [vmem:[#allocation5 + $0xd8] sm:$0xff]  ;;  %v1818_v41 = vld [vmem:[#allocation5 + $0x40] sm:$0xff] }
 0x4d4   :  { %v675_v36 = vmul.f32 %v674_v43, %v5719_v55  ;;  %v6000_v17 = vpack.c.bf16 %v1817_v25, %v1816_v24 }
 0x4d5   :  { %v5948_v60 = vmul.f32 %v1418_v49, %v1411_v11  ;;  %v5950_v51 = vmul.f32 %v1418_v49, %v1412_v19  ;;  %v1624_v8 = vrot.slane %v1623_v18, 2  ;;  %v1632_v54 = vadd.f32 %v1631_v50, %v1630_v20  ;;  %v1838_v50 = vld [vmem:[#allocation5 + $0xe0] sm:$0xff] }
 0x4d6   :  { %v5956_v19 = vpack.c.bf16 %v1831_v1, %v1830_v5  ;;  %v1051_v20 = vmul.f32 %v1049_v31, %v5827_v37  ;;  %v680_v49 = vrot.slane %v5932_v32, %v5703_v13  ;;  %v1840_v31 = vld [vmem:[#allocation5 + $0xf0] sm:$0xff]  ;;  %v1814_v5 = vld [vmem:[#allocation5 + $0x20] sm:$0xff]  ;;  %v1815_v1 = vld [vmem:[#allocation5 + $0x28] sm:$0xff] }
 0x4d7   :  { %v1625_v0 = vadd.f32 %v1624_v8, %v1623_v18  ;;  %v1633_v9 = vrot.slane %v1632_v54, 2  ;;  %v5976_v18 = vpack.c.bf16 %v1837_v47, %v1836_v46  ;;  %v1839_v8 = vld [vmem:[#allocation5 + $0xe8] sm:$0xff] }
 0x4d8   :  { %v5980_v37 = vpack.c.bf16 %v1839_v8, %v1838_v50  ;;  %v1819_v46 = vld [vmem:[#allocation5 + $0x48] sm:$0xff]  ;;  %v676_v50 = vmul.f32 %v674_v43, %v5721_v59 }
 0x4d9   :  { %v1626_v38 = vrot.slane %v1625_v0, 1  ;;  %v1634_v39 = vadd.f32 %v1633_v9, %v1632_v54  ;;  %v1057_v54 = vadd.f32 %v1055_v6, %v1051_v20  ;;  %v1841_v9 = vld [vmem:[#allocation5 + $0xf8] sm:$0xff]  ;;  %v5988_v6 = vpack.c.bf16 %v1811_v29, %v1810_v12  ;;  %v1820_v20 = vld [vmem:[#allocation5 + $0x50] sm:$0xff] }
 0x4da   :  { %v5984_v55 = vpack.c.bf16 %v1841_v9, %v1840_v31  ;;  %v6004_v47 = vpack.c.bf16 %v1819_v46, %v1818_v41  ;;  %v682_v31 = vadd.f32 %v680_v49, %v676_v50  ;;  %v1824_v12 = vld [vmem:[#allocation5 + $0x70] sm:$0xff]  ;;  %v1825_v29 = vld [vmem:[#allocation5 + $0x78] sm:$0xff] }
 0x4db   :  { %v1627_v48 = vadd.f32 %v1626_v38, %v1625_v0  ;;  %v1635_v58 = vrot.slane %v1634_v39, 1  ;;  %v681_v0 = vadd.f32 %v680_v49, %v675_v36  ;;  %4893 = vtanh.f32 %v1057_v54  ;;  %v1812_v38 = vld [vmem:[#allocation5 + $0x10] sm:$0xff]  ;;  %v1821_v36 = vld [vmem:[#allocation5 + $0x58] sm:$0xff]  ;;  %v1822_v54 = vld [vmem:[#allocation5 + $0x60] sm:$0xff] }
 0x4dc   :  { %v6009_v8 = vpack.c.bf16 %v1821_v36, %v1820_v20  ;;  %v6017_v59 = vpack.c.bf16 %v1825_v29, %v1824_v12  ;;  %v235_v49 = vshrl.u32 %v5401_v22, 1  ;;  %v238_v22 = vshrl.u32 %v5429_v33, 1 }
 0x4dd   :  { %3838 = vmatmul.mubr.f32.vlgmr.msra.gmra.mrb[8].mxu0 %v1627_v48  ;;  %v1636_v11 = vadd.f32 %v1635_v58, %v1634_v39  ;;  %4895 = vtanh.f32 %v681_v0  ;;  %v1813_v39 = vld [vmem:[#allocation5 + $0x18] sm:$0xff]  ;;  %v1823_v0 = vld [vmem:[#allocation5 + $0x68] sm:$0xff] }
 0x4de   :  { %4519 = vmatpush3.bf16.msra.mxu0 %v5916_v35  ;;  %3907 = vmatprep.mubr.f32.mxu0 %v4892_v10  ;;  %v5992_v48 = vpack.c.bf16 %v1813_v39, %v1812_v38  ;;  %v6013_v9 = vpack.c.bf16 %v1823_v0, %v1822_v54  ;;  %4897 = vtanh.f32 %v682_v31  ;;  %v243_v38 = vshrl.u32 %v5518_v57, 1 }
 0x4df   :  { %3873 = vmatmul.mubr.f32.vlgmr.msra.gmra.mrb[12].mxu1 %v1636_v11  ;;  %4521 = vmatprep.subr.bf16.mxu0 %v5952_v63  ;;  %v5996_v11 = vpack.c.bf16 %v1815_v1, %v1814_v5  ;;  %v245_v39 = vshrl.u32 %v5540_v62, 1  ;;  %v246_v57 = vshrl.u32 %v5559_v3, 1  ;;  %v1423_v54 = vsub.s32 2, %v5382_v14 }
 0x4e0   :  { %3977 = vmatprep.mubr.msk.f32.mxu1 %vm5154_vm3, %v5153_v42  ;;  %v1798_v0 = vsub.s32 3, %v5382_v14 }
 0x4e1   :  { %v1424_v31 = vrot.slane %v5928_v7, %v1423_v54 }
 0x4e2   :  { %4523 = vmatpush3.bf16.msra.mxu0 %v5952_v63 }
 0x4e3   :  { %4525 = vmatprep.subr.bf16.mxu0 %v5956_v19 }
 0x4e5   :  { %v4894_v58 = vpop.eup %4893 }
 0x4e6   :  { %4527 = vmatpush3.bf16.msra.mxu0 %v5956_v19 }
 0x4e7   :  { %4529 = vmatprep.subr.bf16.mxu0 %v5962_v26  ;;  %v4896_v10 = vpop.eup %4895 }
 0x4e8   :  { %v4898_v43 = vpop.eup %4897 }
 0x4ea   :  { %4531 = vmatpush3.bf16.msra.mxu0 %v5962_v26 }
 0x4eb   :  { %4533 = vmatprep.subr.bf16.mxu0 %v5968_v44 }
 0x4ee   :  { %4535 = vmatpush3.bf16.msra.mxu0 %v5968_v44 }
 0x4ef   :  { %4537 = vmatprep.subr.bf16.mxu0 %v5976_v18 }
 0x4f2   :  { %4539 = vmatpush3.bf16.msra.mxu0 %v5976_v18 }
 0x4f3   :  { %4541 = vmatprep.subr.bf16.mxu0 %v5980_v37 }
 0x4f6   :  { %4543 = vmatpush3.bf16.msra.mxu0 %v5980_v37 }
 0x4f7   :  { %4545 = vmatprep.subr.bf16.mxu0 %v5984_v55 }
 0x4fa   :  { %4547 = vmatpush3.bf16.msra.mxu0 %v5984_v55 }
 0x4fb   :  { %4549 = vmatprep.subr.bf16.mxu0 %v5988_v6 }
 0x4fd   :  { %3908 = vmatmul.mubr.f32.vlgmr.msra.gmra.mrb[10].mxu0 %v4894_v58  ;;  %v247_v58 = vshrl.u32 %v5562_v4, 1 }
 0x4fe   :  { %4551 = vmatpush3.bf16.msra.mxu0 %v5988_v6  ;;  %3942 = vmatprep.mubr.f32.mxu0 %v4896_v10 }
 0x4ff   :  { %4553 = vmatprep.subr.bf16.mxu0 %v5992_v48 }
 0x502   :  { %4555 = vmatpush3.bf16.msra.mxu0 %v5992_v48 }
 0x503   :  { %4557 = vmatprep.subr.bf16.mxu0 %v5996_v11 }
 0x506   :  { %4559 = vmatpush3.bf16.msra.mxu0 %v5996_v11 }
 0x507   :  { %4561 = vmatprep.subr.bf16.mxu0 %v6000_v17 }
 0x50a   :  { %4563 = vmatpush3.bf16.msra.mxu0 %v6000_v17 }
 0x50b   :  { %4565 = vmatprep.subr.bf16.mxu0 %v6004_v47 }
 0x50e   :  { %4567 = vmatpush3.bf16.msra.mxu0 %v6004_v47 }
 0x50f   :  { %4569 = vmatprep.subr.bf16.mxu0 %v6009_v8 }
 0x512   :  { %4571 = vmatpush3.bf16.msra.mxu0 %v6009_v8 }
 0x513   :  { %4573 = vmatprep.subr.bf16.mxu0 %v6013_v9 }
 0x516   :  { %4575 = vmatpush3.bf16.msra.mxu0 %v6013_v9 }
 0x517   :  { %4577 = vmatprep.subr.bf16.mxu0 %v6017_v59 }
 0x51a   :  { %4579 = vmatpush3.bf16.msra.mxu0 %v6017_v59 }
 0x51b   :  { %4629 = vmatprep.subr.bf16.mxu0 %v5916_v35 }
 0x51d   :  { %3943 = vmatmul.mubr.f32.vlgmr.msra.gmra.mrb[10].mxu0 %v4898_v43  ;;  %v1799_v43 = vrot.slane %v5928_v7, %v1798_v0 }
 0x51e   :  { %4631 = vmatpush3.bf16.msra.mxu0 %v5916_v35  ;;  %v232_v35 = vshrl.u32 %v5382_v14, 1 }
 0x51f   :  { %4633 = vmatprep.subr.bf16.mxu0 %v5952_v63 }
 0x522   :  { %4635 = vmatpush3.bf16.msra.mxu0 %v5952_v63  ;;  %v233_v63 = vshrl.u32 %v5388_v16, 1  ;;  %v236_v16 = vshrl.u32 %v5409_v27, 1 }
 0x523   :  { %4637 = vmatprep.subr.bf16.mxu0 %v5956_v19 }
 0x526   :  { %4639 = vmatpush3.bf16.msra.mxu0 %v5956_v19  ;;  %v248_v19 = vshrl.u32 %v5385_v15, 1 }
 0x527   :  { %4641 = vmatprep.subr.bf16.mxu0 %v5962_v26 }
 0x528   :  { %vm249_vm2 = vcmp.eq.s32.totalorder %v232_v35, %v248_v19  ;;  %vm250_vm5 = vcmp.eq.s32.totalorder %v233_v63, %v248_v19  ;;  %vm252_vm12 = vcmp.eq.s32.totalorder %v235_v49, %v248_v19  ;;  %vm253_vm9 = vcmp.eq.s32.totalorder %v236_v16, %v248_v19 }
 0x529   :  { %vm6042_vm8 = vmpackc.low %vm250_vm5, %vm249_vm2  ;;  %vm255_vm6 = vcmp.eq.s32.totalorder %v238_v22, %v248_v19  ;;  %vm260_vm5 = vcmp.eq.s32.totalorder %v243_v38, %v248_v19  ;;  %v1430_v35 = vrot.slane %v5932_v32, %v1423_v54 }
 0x52a   :  { %4643 = vmatpush3.bf16.msra.mxu0 %v5962_v26  ;;  %4582 = vmatpush3.bf16.msk.msra.mxu1 %vm6042_vm8, %v5152_v30 }
 0x52b   :  { %4645 = vmatprep.subr.bf16.mxu0 %v5968_v44  ;;  %4583 = vmatprep.subr.bf16.mxu1 %v5150_v23 }
 0x52e   :  { %4647 = vmatpush3.bf16.msra.mxu0 %v5968_v44  ;;  %v234_v44 = vshrl.u32 %v5398_v21, 1 }
 0x52f   :  { %4649 = vmatprep.subr.bf16.mxu0 %v5976_v18 }
 0x530   :  { %vm251_vm11 = vcmp.eq.s32.totalorder %v234_v44, %v248_v19 }
 0x531   :  { %vm6052_vm4 = vmpackc.low %vm252_vm12, %vm251_vm11 }
 0x532   :  { %4651 = vmatpush3.bf16.msra.mxu0 %v5976_v18  ;;  %4585 = vmatpush3.bf16.msk.msra.mxu1 %vm6052_vm4, %v5152_v30  ;;  %v237_v18 = vshrl.u32 %v5412_v28, 1  ;;  %v240_v28 = vshrl.u32 %v5505_v52, 1 }
 0x533   :  { %4653 = vmatprep.subr.bf16.mxu0 %v5980_v37  ;;  %4586 = vmatprep.subr.bf16.mxu1 %v5150_v23 }
 0x534   :  { %vm254_vm14 = vcmp.eq.s32.totalorder %v237_v18, %v248_v19  ;;  %vm257_vm13 = vcmp.eq.s32.totalorder %v240_v28, %v248_v19 }
 0x535   :  { %vm6062_vm1 = vmpackc.low %vm254_vm14, %vm253_vm9  ;;  %vm262_vm9 = vcmp.eq.s32.totalorder %v245_v39, %v248_v19 }
 0x536   :  { %4655 = vmatpush3.bf16.msra.mxu0 %v5980_v37  ;;  %4588 = vmatpush3.bf16.msk.msra.mxu1 %vm6062_vm1, %v5152_v30  ;;  %v239_v37 = vshrl.u32 %v5432_v34, 1  ;;  %v242_v34 = vshrl.u32 %v5515_v56, 1  ;;  %v2536_v56 = vld [vmem:[#allocation7 + $0x80] sm:$0xff] }
 0x537   :  { %4657 = vmatprep.subr.bf16.mxu0 %v5984_v55  ;;  %4589 = vmatprep.subr.bf16.mxu1 %v5150_v23 }
 0x538   :  { %vm256_vm7 = vcmp.eq.s32.totalorder %v239_v37, %v248_v19  ;;  %vm259_vm2 = vcmp.eq.s32.totalorder %v242_v34, %v248_v19 }
 0x539   :  { %vm6072_vm10 = vmpackc.low %vm256_vm7, %vm255_vm6  ;;  %vm263_vm6 = vcmp.eq.s32.totalorder %v246_v57, %v248_v19  ;;  %vm264_vm7 = vcmp.eq.s32.totalorder %v247_v58, %v248_v19 }
 0x53a   :  { %4659 = vmatpush3.bf16.msra.mxu0 %v5984_v55  ;;  %4591 = vmatpush3.bf16.msk.msra.mxu1 %vm6072_vm10, %v5152_v30  ;;  %v241_v55 = vshrl.u32 %v5508_v53, 1  ;;  %vm6092_vm11 = vmpackc.low %vm260_vm5, %vm259_vm2  ;;  %v244_v53 = vshrl.u32 %v5537_v61, 1  ;;  %v2541_v61 = vld [vmem:[#allocation7 + $0xa8] sm:$0xff] }
 0x53b   :  { %4661 = vmatprep.subr.bf16.mxu0 %v5988_v6  ;;  %4592 = vmatprep.subr.bf16.mxu1 %v5150_v23 }
 0x53c   :  { %vm258_vm15 = vcmp.eq.s32.totalorder %v241_v55, %v248_v19  ;;  %vm261_vm12 = vcmp.eq.s32.totalorder %v244_v53, %v248_v19  ;;  %v1805_v19 = vrot.slane %v5932_v32, %v1798_v0  ;;  %v1426_v32 = vmul.f32 %v1424_v31, %v5950_v51 }
 0x53d   :  { %vm6082_vm0 = vmpackc.low %vm258_vm15, %vm257_vm13 }
 0x53e   :  { %4594 = vmatpush3.bf16.msk.msra.mxu1 %vm6082_vm0, %v5152_v30  ;;  %vm6102_vm14 = vmpackc.low %vm262_vm9, %vm261_vm12 }
 0x53f   :  { %4595 = vmatprep.subr.bf16.mxu1 %v5150_v23  ;;  %vm6112_vm13 = vmpackc.low %vm264_vm7, %vm263_vm6 }
 0x542   :  { %4597 = vmatpush3.bf16.msk.msra.mxu1 %vm6092_vm11, %v5152_v30 }
 0x543   :  { %4598 = vmatprep.subr.bf16.mxu1 %v5150_v23 }
 0x546   :  { %4600 = vmatpush3.bf16.msk.msra.mxu1 %vm6102_vm14, %v5152_v30 }
 0x547   :  { %4601 = vmatprep.subr.bf16.mxu1 %v5150_v23 }
 0x54a   :  { %4603 = vmatpush3.bf16.msk.msra.mxu1 %vm6112_vm13, %v5152_v30 }
 0x54b   :  { %4604 = vmatprep.subr.bf16.mxu1 %v5150_v23 }
 0x5b0   :  { %v1703_v62 = vpop.f32.mrb[8].mxu0 }
 0x5b1   :  { %v1777_v5 = vmul.f32 0.015625, %v1703_v62  ;;  %v3839_v1 = vpop.f32.mrb[9].mxu0 }
 0x5b2   :  { %v1773_v3 = vpop.f32.mrb[12].mxu1 }
 0x5b3   :  { %v1779_v10 = vmul.f32 %v1777_v5, %v1777_v5  ;;  %v1785_v4 = vrot.slane %v1777_v5, %v5703_v13  ;;  %v1778_v24 = vmul.f32 0.015625, %v1773_v3  ;;  %v3874_v25 = vpop.f32.mrb[13].mxu1 }
 0x5b5   :  { %v1786_v41 = vsub.f32 %v5941_v2, %v1785_v4  ;;  %v1787_v46 = vsub.f32 %v5937_v40, %v1785_v4  ;;  %v1780_v20 = vsub.f32 %v1778_v24, %v1779_v10  ;;  %v1425_v2 = vmul.f32 %v1424_v31, %v5948_v60 }
 0x5b6   :  { %v1432_v60 = vadd.f32 %v1430_v35, %v1426_v32  ;;  %v2539_v32 = vld [vmem:[#allocation7 + $0x98] sm:$0xff] }
 0x5b7   :  { %v1781_v36 = vmax.f32 %v1780_v20, 0.0  ;;  %v1431_v16 = vadd.f32 %v1430_v35, %v1425_v2 }
 0x5b9   :  { %v1788_v50 = vadd.f32 1e-05, %v1781_v36 }
 0x5bb   :  { %4899 = vrsqrt.f32 %v1788_v50 }
 0x5c5   :  { %v4900_v12 = vpop.eup %4899 }
 0x5c6   :  { %v1793_v29 = vrot.slane %v4900_v12, %v5703_v13 }
 0x5c8   :  { %v1794_v40 = vmul.f32 %v1793_v29, %v1786_v41  ;;  %v1795_v63 = vmul.f32 %v1793_v29, %v1787_v46 }
 0x5ca   :  { %v1800_v44 = vmul.f32 %v1799_v43, %v1794_v40  ;;  %v1801_v49 = vmul.f32 %v1799_v43, %v1795_v63 }
 0x5cc   :  { %v1806_v18 = vadd.f32 %v1805_v19, %v1800_v44  ;;  %v1807_v14 = vadd.f32 %v1805_v19, %v1801_v49 }
 0x5ce   :  { %4901 = vtanh.f32 %v1806_v18 }
 0x5cf   :  { %4903 = vtanh.f32 %v1807_v14 }
 0x5d0   :  { %4905 = vtanh.f32 %v1431_v16 }
 0x5d1   :  { %4907 = vtanh.f32 %v1432_v60 }
 0x5d8   :  { %v4902_v22 = vpop.eup %4901 }
 0x5d9   :  { %v4904_v37 = vpop.eup %4903  ;;  %4047 = vmatprep.mubr.f32.mxu0 %v4902_v22 }
 0x5da   :  { %v4906_v7 = vpop.eup %4905  ;;  %4048 = vmatmul.mubr.f32.vlgmr.msra.gmra.mrb[12].mxu0 %v4904_v37  ;;  %v2537_v37 = vld [vmem:[#allocation7 + $0x88] sm:$0xff] }
 0x5db   :  { %4663 = vmatpush3.bf16.msra.mxu0 %v5988_v6  ;;  %4082 = vmatprep.mubr.f32.mxu0 %v4906_v7  ;;  %v4908_v34 = vpop.eup %4907  ;;  %v2538_v7 = vld [vmem:[#allocation7 + $0x90] sm:$0xff] }
 0x5dc   :  { %4665 = vmatprep.subr.bf16.mxu0 %v5992_v48  ;;  %v4744_v60 = vpack.c.bf16 %v2539_v32, %v2538_v7  ;;  %v2527_v7 = vld [vmem:[#allocation7 + $0x38] sm:$0xff] }
 0x5df   :  { %4667 = vmatpush3.bf16.msra.mxu0 %v5992_v48 }
 0x5e0   :  { %4669 = vmatprep.subr.bf16.mxu0 %v5996_v11 }
 0x5e3   :  { %4671 = vmatpush3.bf16.msra.mxu0 %v5996_v11 }
 0x5e4   :  { %4673 = vmatprep.subr.bf16.mxu0 %v6000_v17 }
 0x5e7   :  { %4675 = vmatpush3.bf16.msra.mxu0 %v6000_v17 }
 0x5e8   :  { %4677 = vmatprep.subr.bf16.mxu0 %v6004_v47 }
 0x5eb   :  { %4679 = vmatpush3.bf16.msra.mxu0 %v6004_v47 }
 0x5ec   :  { %4681 = vmatprep.subr.bf16.mxu0 %v6009_v8 }
 0x5ef   :  { %4683 = vmatpush3.bf16.msra.mxu0 %v6009_v8 }
 0x5f0   :  { %v6143_v6 = vpop.f32.mrb[10].mxu0  ;;  %4685 = vmatprep.subr.bf16.mxu0 %v6013_v9 }
 0x5f1   :  { %v2000_v48 = vmul.f32 %v6143_v6, %v6143_v6  ;;  %v6148_v51 = vpop.f32.mrb[11].mxu0 }
 0x5f2   :  { %v1992_v11 = vadd.f32 %v6143_v6, %v6148_v51  ;;  %v1999_v17 = vmul.f32 %v6148_v51, %v6148_v51 }
 0x5f3   :  { %4687 = vmatpush3.bf16.msra.mxu0 %v6013_v9 }
 0x5f4   :  { %v1993_v47 = vrot.slane %v1992_v11, 4  ;;  %v2001_v28 = vadd.f32 %v2000_v48, %v1999_v17  ;;  %4689 = vmatprep.subr.bf16.mxu0 %v6017_v59  ;;  %v2542_v48 = vld [vmem:[#allocation7 + $0xb0] sm:$0xff]  ;;  %v2544_v17 = vld [vmem:[#allocation7 + $0xc0] sm:$0xff] }
 0x5f6   :  { %v1994_v8 = vadd.f32 %v1993_v47, %v1992_v11  ;;  %v2002_v9 = vrot.slane %v2001_v28, 4  ;;  %v2545_v47 = vld [vmem:[#allocation7 + $0xc8] sm:$0xff] }
 0x5f7   :  { %4691 = vmatpush3.bf16.msra.mxu0 %v6017_v59 }
 0x5f8   :  { %v1995_v55 = vrot.slane %v1994_v8, 2  ;;  %v2003_v59 = vadd.f32 %v2002_v9, %v2001_v28  ;;  %v4756_v28 = vpack.c.bf16 %v2545_v47, %v2544_v17  ;;  %v2532_v17 = vld [vmem:[#allocation7 + $0x60] sm:$0xff]  ;;  %v2533_v47 = vld [vmem:[#allocation7 + $0x68] sm:$0xff] }
 0x5fa   :  { %v1996_v38 = vadd.f32 %v1995_v55, %v1994_v8  ;;  %4083 = vmatmul.mubr.f32.vlgmr.msra.gmra.mrb[12].mxu0 %v4908_v34  ;;  %v2004_v57 = vrot.slane %v2003_v59, 2  ;;  %v2546_v8 = vld [vmem:[#allocation7 + $0xd0] sm:$0xff]  ;;  %v2547_v55 = vld [vmem:[#allocation7 + $0xd8] sm:$0xff] }
 0x5fb   :  { %v4760_v34 = vpack.c.bf16 %v2547_v55, %v2546_v8  ;;  %v4796_v8 = vpack.c.bf16 %v2533_v47, %v2532_v17  ;;  %v2534_v55 = vld [vmem:[#allocation7 + $0x70] sm:$0xff] }
 0x5fc   :  { %v1997_v53 = vrot.slane %v1996_v38, 1  ;;  %v2005_v58 = vadd.f32 %v2004_v57, %v2003_v59  ;;  %v2551_v59 = vld [vmem:[#allocation7 + $0xf8] sm:$0xff] }
 0x5fe   :  { %v1998_v39 = vadd.f32 %v1997_v53, %v1996_v38  ;;  %v2006_v62 = vrot.slane %v2005_v58, 1  ;;  %v2548_v38 = vld [vmem:[#allocation7 + $0xe0] sm:$0xff]  ;;  %v2549_v53 = vld [vmem:[#allocation7 + $0xe8] sm:$0xff] }
 0x5ff   :  { %v4764_v9 = vpack.c.bf16 %v2549_v53, %v2548_v38 }
 0x600   :  { %3978 = vmatmul.mubr.f32.vlgmr.msra.gmra.mrb[14].mxu1 %v1998_v39  ;;  %v2007_v5 = vadd.f32 %v2006_v62, %v2005_v58  ;;  %v2550_v39 = vld [vmem:[#allocation7 + $0xf0] sm:$0xff]  ;;  %v2520_v58 = vld [vmem:[#allocation7] sm:$0xff]  ;;  %v2521_v62 = vld [vmem:[#allocation7 + $0x8] sm:$0xff] }
 0x601   :  { %4606 = vmatpush3.bf16.msk.msra.mxu1 %vm6042_vm8, %v5152_v30  ;;  %4012 = vmatprep.mubr.msk.f32.mxu1 %vm5154_vm3, %v5153_v42  ;;  %v4768_v57 = vpack.c.bf16 %v2551_v59, %v2550_v39  ;;  %v2750_v39 = vld [vmem:[#allocation8 + $0x8] sm:$0xff]  ;;  %v2751_v59 = vld [vmem:[#allocation8 + $0x10] sm:$0xff] }
 0x602   :  { %4607 = vmatprep.subr.bf16.mxu1 %v5150_v23 }
 0x605   :  { %4609 = vmatpush3.bf16.msk.msra.mxu1 %vm6052_vm4, %v5152_v30 }
 0x606   :  { %4610 = vmatprep.subr.bf16.mxu1 %v5150_v23 }
 0x609   :  { %4612 = vmatpush3.bf16.msk.msra.mxu1 %vm6062_vm1, %v5152_v30 }
 0x60a   :  { %4613 = vmatprep.subr.bf16.mxu1 %v5150_v23 }
 0x60d   :  { %4615 = vmatpush3.bf16.msk.msra.mxu1 %vm6072_vm10, %v5152_v30 }
 0x60e   :  { %4616 = vmatprep.subr.bf16.mxu1 %v5150_v23 }
 0x611   :  { %4618 = vmatpush3.bf16.msk.msra.mxu1 %vm6082_vm0, %v5152_v30 }
 0x612   :  { %4619 = vmatprep.subr.bf16.mxu1 %v5150_v23 }
 0x615   :  { %4621 = vmatpush3.bf16.msk.msra.mxu1 %vm6092_vm11, %v5152_v30 }
 0x616   :  { %4622 = vmatprep.subr.bf16.mxu1 %v5150_v23 }
 0x619   :  { %4624 = vmatpush3.bf16.msk.msra.mxu1 %vm6102_vm14, %v5152_v30 }
 0x61a   :  { %4625 = vmatprep.subr.bf16.mxu1 %v5150_v23 }
 0x61d   :  { %4627 = vmatpush3.bf16.msk.msra.mxu1 %vm6112_vm13, %v5152_v30 }
 0x61e   :  { %4692 = vmatprep.subr.bf16.mxu1 %v5150_v23 }
 0x620   :  { %4013 = vmatmul.mubr.f32.vlgmr.msra.gmra.mrb[16].mxu1 %v2007_v5  ;;  %v4772_v5 = vpack.c.bf16 %v2521_v62, %v2520_v58  ;;  %v2753_v62 = vld [vmem:[#allocation8 + $0x20] sm:$0xff] }
 0x621   :  { %4694 = vmatpush3.bf16.msk.msra.mxu1 %vm6042_vm8, %v5152_v30  ;;  %4117 = vmatprep.mubr.msk.f32.mxu1 %vm5154_vm3, %v5153_v42 }
 0x622   :  { %4695 = vmatprep.subr.bf16.mxu1 %v5150_v23 }
 0x625   :  { %4697 = vmatpush3.bf16.msk.msra.mxu1 %vm6052_vm4, %v5152_v30 }
 0x626   :  { %4698 = vmatprep.subr.bf16.mxu1 %v5150_v23 }
 0x629   :  { %4700 = vmatpush3.bf16.msk.msra.mxu1 %vm6062_vm1, %v5152_v30 }
 0x62a   :  { %4701 = vmatprep.subr.bf16.mxu1 %v5150_v23 }
 0x62d   :  { %4703 = vmatpush3.bf16.msk.msra.mxu1 %vm6072_vm10, %v5152_v30 }
 0x62e   :  { %4704 = vmatprep.subr.bf16.mxu1 %v5150_v23 }
 0x631   :  { %4706 = vmatpush3.bf16.msk.msra.mxu1 %vm6082_vm0, %v5152_v30 }
 0x632   :  { %4707 = vmatprep.subr.bf16.mxu1 %v5150_v23 }
 0x635   :  { %4709 = vmatpush3.bf16.msk.msra.mxu1 %vm6092_vm11, %v5152_v30 }
 0x636   :  { %4710 = vmatprep.subr.bf16.mxu1 %v5150_v23 }
 0x639   :  { %4712 = vmatpush3.bf16.msk.msra.mxu1 %vm6102_vm14, %v5152_v30 }
 0x63a   :  { %4713 = vmatprep.subr.bf16.mxu1 %v5150_v23 }
 0x63d   :  { %4715 = vmatpush3.bf16.msk.msra.mxu1 %vm6112_vm13, %v5152_v30 }
 0x63e   :  { %4716 = vmatprep.subr.bf16.mxu1 %v5150_v23 }
 0x6cd   :  { %v6225_v1 = vpop.f32.mrb[12].mxu0 }
 0x6ce   :  { %v2339_v3 = vmul.f32 %v6225_v1, %v6225_v1  ;;  %v6229_v10 = vpop.f32.mrb[13].mxu0 }
 0x6cf   :  { %v2331_v4 = vadd.f32 %v6225_v1, %v6229_v10  ;;  %v2338_v24 = vmul.f32 %v6229_v10, %v6229_v10 }
 0x6d1   :  { %v2332_v25 = vrot.slane %v2331_v4, 4  ;;  %v2340_v41 = vadd.f32 %v2339_v3, %v2338_v24 }
 0x6d3   :  { %v2333_v46 = vadd.f32 %v2332_v25, %v2331_v4  ;;  %v2074_v20 = vpop.f32.mrb[14].mxu1  ;;  %v2341_v2 = vrot.slane %v2340_v41, 4 }
 0x6d4   :  { %v2148_v36 = vmul.f32 0.03125, %v2074_v20  ;;  %v3979_v50 = vpop.f32.mrb[15].mxu1 }
 0x6d5   :  { %v2334_v54 = vrot.slane %v2333_v46, 2 }
 0x6d6   :  { %v2156_v0 = vrot.slane %v2148_v36, %v5703_v13  ;;  %v2150_v27 = vmul.f32 %v2148_v36, %v2148_v36 }
 0x6d7   :  { %v2335_v31 = vadd.f32 %v2334_v54, %v2333_v46 }
 0x6d8   :  { %v2157_v12 = vsub.f32 %v6148_v51, %v2156_v0  ;;  %v2158_v29 = vsub.f32 %v6143_v6, %v2156_v0  ;;  %v2543_v51 = vld [vmem:[#allocation7 + $0xb8] sm:$0xff] }
 0x6d9   :  { %v2336_v43 = vrot.slane %v2335_v31, 1  ;;  %v4752_v11 = vpack.c.bf16 %v2543_v51, %v2542_v48  ;;  %v2531_v48 = vld [vmem:[#allocation7 + $0x58] sm:$0xff] }
 0x6db   :  { %v2337_v35 = vadd.f32 %v2336_v43, %v2335_v31  ;;  %v308_v43 = vld [vmem:[#allocation13] sm:$0x3] }
 0x6dd   :  { %4118 = vmatmul.mubr.f32.vlgmr.msra.gmra.mrb[18].mxu1 %v2337_v35 }
 0x6de   :  { %4718 = vmatpush3.bf16.msk.msra.mxu1 %vm6042_vm8, %v5152_v30  ;;  %4152 = vmatprep.mubr.msk.f32.mxu1 %vm5154_vm3, %v5153_v42  ;;  %v2342_v42 = vadd.f32 %v2341_v2, %v2340_v41 }
 0x6df   :  { %4719 = vmatprep.subr.bf16.mxu1 %v5150_v23 }
 0x6e0   :  { %v2343_v26 = vrot.slane %v2342_v42, 2 }
 0x6e2   :  { %4721 = vmatpush3.bf16.msk.msra.mxu1 %vm6052_vm4, %v5152_v30  ;;  %v2344_v21 = vadd.f32 %v2343_v26, %v2342_v42  ;;  %v2176_v42 = vrot.slane %v308_v43, %v5703_v13 }
 0x6e3   :  { %4722 = vmatprep.subr.bf16.mxu1 %v5150_v23 }
 0x6e4   :  { %v2345_v33 = vrot.slane %v2344_v21, 1 }
 0x6e6   :  { %4724 = vmatpush3.bf16.msk.msra.mxu1 %vm6062_vm1, %v5152_v30  ;;  %v2346_v52 = vadd.f32 %v2345_v33, %v2344_v21 }
 0x6e7   :  { %4725 = vmatprep.subr.bf16.mxu1 %v5150_v23 }
 0x6ea   :  { %4727 = vmatpush3.bf16.msk.msra.mxu1 %vm6072_vm10, %v5152_v30 }
 0x6eb   :  { %4728 = vmatprep.subr.bf16.mxu1 %v5150_v23 }
 0x6ee   :  { %4730 = vmatpush3.bf16.msk.msra.mxu1 %vm6082_vm0, %v5152_v30 }
 0x6ef   :  { %4731 = vmatprep.subr.bf16.mxu1 %v5150_v23 }
 0x6f2   :  { %4733 = vmatpush3.bf16.msk.msra.mxu1 %vm6092_vm11, %v5152_v30 }
 0x6f3   :  { %v2144_v15 = vpop.f32.mrb[16].mxu1  ;;  %4734 = vmatprep.subr.bf16.mxu1 %v5150_v23 }
 0x6f4   :  { %v2149_v40 = vmul.f32 0.03125, %v2144_v15  ;;  %v4014_v63 = vpop.f32.mrb[17].mxu1 }
 0x6f6   :  { %v2151_v19 = vsub.f32 %v2149_v40, %v2150_v27  ;;  %4736 = vmatpush3.bf16.msk.msra.mxu1 %vm6102_vm14, %v5152_v30  ;;  %v2515_v27 = vrot.slane %v308_v43, %v5923_v45  ;;  %v2764_v43 = vld [vmem:[#allocation8 + $0x78] sm:$0xff] }
 0x6f7   :  { %4737 = vmatprep.subr.bf16.mxu1 %v5150_v23  ;;  %v4740_v23 = vpack.c.bf16 %v2537_v37, %v2536_v56 }
 0x6f8   :  { %v2152_v44 = vmax.f32 %v2151_v19, 0.0 }
 0x6f9   :  { %4741 = vmatprep.subr.bf16.mxu0 %v4740_v23 }
 0x6fa   :  { %v2159_v49 = vadd.f32 1e-05, %v2152_v44  ;;  %4739 = vmatpush3.bf16.msk.msra.mxu1 %vm6112_vm13, %v5152_v30  ;;  %4743 = vmatpush3.bf16.msra.mxu0 %v4740_v23  ;;  %v2540_v30 = vld [vmem:[#allocation7 + $0xa0] sm:$0xff]  ;;  %v2526_v23 = vld [vmem:[#allocation7 + $0x30] sm:$0xff] }
 0x6fb   :  { %4745 = vmatprep.subr.bf16.mxu0 %v4744_v60  ;;  %v4748_v6 = vpack.c.bf16 %v2541_v61, %v2540_v30  ;;  %v4784_v32 = vpack.c.bf16 %v2527_v7, %v2526_v23  ;;  %v2529_v30 = vld [vmem:[#allocation7 + $0x48] sm:$0xff] }
 0x6fc   :  { %4909 = vrsqrt.f32 %v2159_v49  ;;  %v2522_v49 = vld [vmem:[#allocation7 + $0x10] sm:$0xff] }
 0x6fd   :  { %4153 = vmatmul.mubr.f32.vlgmr.msra.gmra.mrb[20].mxu1 %v2346_v52  ;;  %v2523_v52 = vld [vmem:[#allocation7 + $0x18] sm:$0xff] }
 0x6fe   :  { %4747 = vmatpush3.bf16.msra.mxu0 %v4744_v60  ;;  %v2528_v60 = vld [vmem:[#allocation7 + $0x40] sm:$0xff] }
 0x6ff   :  { %4749 = vmatprep.subr.bf16.mxu0 %v4748_v6  ;;  %v4788_v61 = vpack.c.bf16 %v2529_v30, %v2528_v60 }
 0x702   :  { %4751 = vmatpush3.bf16.msra.mxu0 %v4748_v6  ;;  %v2530_v6 = vld [vmem:[#allocation7 + $0x50] sm:$0xff] }
 0x703   :  { %4753 = vmatprep.subr.bf16.mxu0 %v4752_v11 }
 0x706   :  { %v4910_v16 = vpop.eup %4909  ;;  %4755 = vmatpush3.bf16.msra.mxu0 %v4752_v11  ;;  %v4792_v11 = vpack.c.bf16 %v2531_v48, %v2530_v6 }
 0x707   :  { %v2164_v18 = vrot.slane %v4910_v16, %v5703_v13  ;;  %4757 = vmatprep.subr.bf16.mxu0 %v4756_v28 }
 0x709   :  { %v6272_v14 = vmul.f32 %v2164_v18, %v2157_v12  ;;  %v6274_v22 = vmul.f32 %v2164_v18, %v2158_v29  ;;  %v307_v29 = vld [vmem:[%s6316_s9] sm:$0x3]  ;;  %v4776_v18 = vpack.c.bf16 %v2523_v52, %v2522_v49 }
 0x70a   :  { %4759 = vmatpush3.bf16.msra.mxu0 %v4756_v28  ;;  %v2170_v35 = vrot.slane %v307_v29, %v5703_v13 }
 0x70b   :  { %4761 = vmatprep.subr.bf16.mxu0 %v4760_v34 }
 0x70c   :  { %v2171_v26 = vmul.f32 %v2170_v35, %v6272_v14  ;;  %v2525_v14 = vld [vmem:[#allocation7 + $0x28] sm:$0xff]  ;;  %v2172_v51 = vmul.f32 %v2170_v35, %v6274_v22  ;;  %v2749_v22 = vld [vmem:[#allocation8] sm:$0xff] }
 0x70e   :  { %4763 = vmatpush3.bf16.msra.mxu0 %v4760_v34  ;;  %v2177_v19 = vadd.f32 %v2176_v42, %v2171_v26  ;;  %v2178_v28 = vadd.f32 %v2176_v42, %v2172_v51  ;;  %v2535_v34 = vld [vmem:[#allocation7 + $0x78] sm:$0xff]  ;;  %v3127_v51 = vld [vmem:[#allocation14] ss:$0 sm:$0xff] }
 0x70f   :  { %4765 = vmatprep.subr.bf16.mxu0 %v4764_v9  ;;  %v4800_v38 = vpack.c.bf16 %v2535_v34, %v2534_v55  ;;  %v3128_v34 = vld [vmem:[#allocation10] ss:$0 sm:$0xff] }
 0x712   :  { %4767 = vmatpush3.bf16.msra.mxu0 %v4764_v9  ;;  %v4804_v9 = vpack.c.bf16 %v2750_v39, %v2749_v22 }
 0x713   :  { %4769 = vmatprep.subr.bf16.mxu0 %v4768_v57 }
 0x714   :  { %4805 = vmatprep.subr.bf16.mxu1 %v4804_v9 }
 0x715   :  { %4807 = vmatpush3.bf16.msra.mxu1 %v4804_v9 }
 0x716   :  { %4771 = vmatpush3.bf16.msra.mxu0 %v4768_v57  ;;  %v2752_v57 = vld [vmem:[#allocation8 + $0x18] sm:$0xff] }
 0x717   :  { %4773 = vmatprep.subr.bf16.mxu0 %v4772_v5  ;;  %v4808_v58 = vpack.c.bf16 %v2752_v57, %v2751_v59 }
 0x719   :  { %4809 = vmatprep.subr.bf16.mxu1 %v4808_v58 }
 0x71a   :  { %4811 = vmatpush3.bf16.msra.mxu1 %v4808_v58 }
 0x7b0   :  { %v2413_v3 = vpop.f32.mrb[18].mxu1 }
 0x7b1   :  { %v2487_v4 = vmul.f32 0.03125, %v2413_v3  ;;  %v4119_v24 = vpop.f32.mrb[19].mxu1 }
 0x7b2   :  { %v2756_v24 = vld [vmem:[#allocation8 + $0x38] sm:$0xff] }
 0x7b3   :  { %v2495_v25 = vrot.slane %v2487_v4, %v5703_v13  ;;  %v2489_v36 = vmul.f32 %v2487_v4, %v2487_v4  ;;  %v2755_v4 = vld [vmem:[#allocation8 + $0x30] sm:$0xff] }
 0x7b5   :  { %v2496_v41 = vsub.f32 %v6229_v10, %v2495_v25  ;;  %v2497_v46 = vsub.f32 %v6225_v1, %v2495_v25  ;;  %v2509_v1 = vrot.slane %v307_v29, %v5923_v45  ;;  %v4816_v25 = vpack.c.bf16 %v2756_v24, %v2755_v4 }
 0x7d0   :  { %v2483_v20 = vpop.f32.mrb[20].mxu1 }
 0x7d1   :  { %v2488_v50 = vmul.f32 0.03125, %v2483_v20  ;;  %v4154_v54 = vpop.f32.mrb[21].mxu1 }
 0x7d3   :  { %v2490_v0 = vsub.f32 %v2488_v50, %v2489_v36  ;;  %v2759_v36 = vld [vmem:[#allocation8 + $0x50] sm:$0xff]  ;;  %v2760_v50 = vld [vmem:[#allocation8 + $0x58] sm:$0xff] }
 0x7d4   :  { %v4824_v54 = vpack.c.bf16 %v2760_v50, %v2759_v36 }
 0x7d5   :  { %v2491_v31 = vmax.f32 %v2490_v0, 0.0  ;;  %v2761_v0 = vld [vmem:[#allocation8 + $0x60] sm:$0xff] }
 0x7d7   :  { %v2498_v12 = vadd.f32 1e-05, %v2491_v31  ;;  %v2762_v31 = vld [vmem:[#allocation8 + $0x68] sm:$0xff] }
 0x7d8   :  { %v4828_v29 = vpack.c.bf16 %v2762_v31, %v2761_v0 }
 0x7d9   :  { %4911 = vrsqrt.f32 %v2498_v12  ;;  %v2763_v12 = vld [vmem:[#allocation8 + $0x70] sm:$0xff] }
 0x7da   :  { %v4832_v35 = vpack.c.bf16 %v2764_v43, %v2763_v12 }
 0x7e3   :  { %v4912_v2 = vpop.eup %4911 }
 0x7e4   :  { %v2503_v10 = vrot.slane %v4912_v2, %v5703_v13  ;;  %v2524_v13 = vld [vmem:[#allocation7 + $0x20] sm:$0xff] }
 0x7e5   :  { %v4780_v45 = vpack.c.bf16 %v2525_v14, %v2524_v13 }
 0x7e6   :  { %v2504_v15 = vmul.f32 %v2503_v10, %v2496_v41  ;;  %v2505_v21 = vmul.f32 %v2503_v10, %v2497_v46  ;;  %v2757_v41 = vld [vmem:[#allocation8 + $0x40] sm:$0xff]  ;;  %v2758_v46 = vld [vmem:[#allocation8 + $0x48] sm:$0xff] }
 0x7e7   :  { %v4820_v20 = vpack.c.bf16 %v2758_v46, %v2757_v41 }
 0x7e8   :  { %v2510_v40 = vmul.f32 %v2509_v1, %v2504_v15  ;;  %v2511_v63 = vmul.f32 %v2509_v1, %v2505_v21 }
 0x7ea   :  { %v2516_v33 = vadd.f32 %v2515_v27, %v2510_v40  ;;  %v2517_v44 = vadd.f32 %v2515_v27, %v2511_v63 }
 0x7ec   :  { %4913 = vtanh.f32 %v2516_v33 }
 0x7ed   :  { %4915 = vtanh.f32 %v2517_v44 }
 0x7ee   :  { %4917 = vtanh.f32 %v2177_v19 }
 0x7ef   :  { %4919 = vtanh.f32 %v2178_v28 }
 0x7f6   :  { %v4914_v16 = vpop.eup %4913 }
 0x7f7   :  { %v4916_v56 = vpop.eup %4915  ;;  %4187 = vmatprep.mubr.f32.mxu0 %v4914_v16 }
 0x7f8   :  { %v4918_v37 = vpop.eup %4917  ;;  %4188 = vmatmul.mubr.f32.vlgmr.msra.gmra.mrb[14].mxu0 %v4916_v56 }
 0x7f9   :  { %4775 = vmatpush3.bf16.msra.mxu0 %v4772_v5  ;;  %4222 = vmatprep.mubr.f32.mxu0 %v4918_v37  ;;  %v4920_v53 = vpop.eup %4919  ;;  %v2754_v5 = vld [vmem:[#allocation8 + $0x28] sm:$0xff] }
 0x7fa   :  { %4777 = vmatprep.subr.bf16.mxu0 %v4776_v18  ;;  %v4812_v3 = vpack.c.bf16 %v2754_v5, %v2753_v62 }
 0x7fc   :  { %4813 = vmatprep.subr.bf16.mxu1 %v4812_v3 }
 0x7fd   :  { %4779 = vmatpush3.bf16.msra.mxu0 %v4776_v18  ;;  %4815 = vmatpush3.bf16.msra.mxu1 %v4812_v3 }
 0x7fe   :  { %4781 = vmatprep.subr.bf16.mxu0 %v4780_v45  ;;  %4817 = vmatprep.subr.bf16.mxu1 %v4816_v25 }
 0x801   :  { %4783 = vmatpush3.bf16.msra.mxu0 %v4780_v45  ;;  %4819 = vmatpush3.bf16.msra.mxu1 %v4816_v25 }
 0x802   :  { %4785 = vmatprep.subr.bf16.mxu0 %v4784_v32  ;;  %4821 = vmatprep.subr.bf16.mxu1 %v4820_v20 }
 0x805   :  { %4787 = vmatpush3.bf16.msra.mxu0 %v4784_v32  ;;  %4823 = vmatpush3.bf16.msra.mxu1 %v4820_v20 }
 0x806   :  { %4789 = vmatprep.subr.bf16.mxu0 %v4788_v61  ;;  %4825 = vmatprep.subr.bf16.mxu1 %v4824_v54 }
 0x809   :  { %4791 = vmatpush3.bf16.msra.mxu0 %v4788_v61  ;;  %4827 = vmatpush3.bf16.msra.mxu1 %v4824_v54  ;;  %v3126_v61 = vld [vmem:[%s6318_s11] ss:$0 sm:$0xff]  ;;  %s5103_s11 = scalar_lea.vmem %s2855_s5, 256 }
 0x80a   :  { %4793 = vmatprep.subr.bf16.mxu0 %v4792_v11  ;;  %4829 = vmatprep.subr.bf16.mxu1 %v4828_v29  ;;  %p5104_p8 = scmp.ne.s32.totalorder %s2855_s5, %s5103_s11  ;;  %p5109_p10 = scmp.lt.s32.totalorder %s5103_s11, %s5103_s11 }
 0x80c   :  { %p5110_p11 = por %p5109_p10, %p5108_p9 }
 0x80d   :  { %4795 = vmatpush3.bf16.msra.mxu0 %v4792_v11  ;;  %4831 = vmatpush3.bf16.msra.mxu1 %v4828_v29 }
 0x80e   :  { %4797 = vmatprep.subr.bf16.mxu0 %v4796_v8  ;;  %4833 = vmatprep.subr.bf16.mxu1 %v4832_v35  ;;  %p5111_p12 = pnand %p5110_p11, %p5104_p8 }
 0x811   :  { %4799 = vmatpush3.bf16.msra.mxu0 %v4796_v8  ;;  %4835 = vmatpush3.bf16.msra.mxu1 %v4832_v35 }
 0x812   :  { %4801 = vmatprep.subr.bf16.mxu0 %v4800_v38 }
 0x815   :  { %4803 = vmatpush3.bf16.msra.mxu0 %v4800_v38 }
 0x818   :  { %4223 = vmatmul.mubr.f32.vlgmr.msra.gmra.mrb[14].mxu0 %v4920_v53 }
 0x8eb   :  { %v4224_v2 = vpop.f32.mrb[14].mxu0 }
 0x8ec   :  { %v2712_v10 = vmul.f32 %v4224_v2, %v4224_v2  ;;  %v2693_v1 = vpop.f32.mrb[15].mxu0 }
 0x8ed   :  { %v2704_v42 = vadd.f32 %v4224_v2, %v2693_v1  ;;  %v2711_v26 = vmul.f32 %v2693_v1, %v2693_v1 }
 0x8ef   :  { %v2705_v15 = vrot.slane %v2704_v42, 4  ;;  %v2713_v21 = vadd.f32 %v2712_v10, %v2711_v26 }
 0x8f1   :  { %v2706_v27 = vadd.f32 %v2705_v15, %v2704_v42  ;;  %v2714_v40 = vrot.slane %v2713_v21, 4 }
 0x8f3   :  { %v2707_v63 = vrot.slane %v2706_v27, 2  ;;  %v2715_v19 = vadd.f32 %v2714_v40, %v2713_v21 }
 0x8f5   :  { %v2708_v33 = vadd.f32 %v2707_v63, %v2706_v27  ;;  %v2716_v44 = vrot.slane %v2715_v19, 2 }
 0x8f7   :  { %v2709_v49 = vrot.slane %v2708_v33, 1  ;;  %v2717_v52 = vadd.f32 %v2716_v44, %v2715_v19 }
 0x8f9   :  { %v2710_v16 = vadd.f32 %v2709_v49, %v2708_v33  ;;  %v2718_v18 = vrot.slane %v2717_v52, 1 }
 0x8fb   :  { %v2719_v56 = vadd.f32 %v2718_v18, %v2717_v52  ;;  %v2720_v13 = vmul.f32 0.0625, %v2710_v16 }
 0x8fd   :  { %v2721_v14 = vmul.f32 0.0625, %v2719_v56  ;;  %v2722_v37 = vmul.f32 %v2720_v13, %v2720_v13  ;;  %v2725_v45 = vsub.f32 %v2693_v1, %v2720_v13  ;;  %v2726_v23 = vsub.f32 %v4224_v2, %v2720_v13 }
 0x8ff   :  { %v2723_v7 = vsub.f32 %v2721_v14, %v2722_v37 }
 0x901   :  { %v2724_v32 = vmax.f32 %v2723_v7, 0.0 }
 0x903   :  { %v2727_v60 = vadd.f32 1e-05, %v2724_v32 }
 0x905   :  { %4921 = vrsqrt.f32 %v2727_v60 }
 0x90f   :  { %v4922_v30 = vpop.eup %4921 }
 0x910   :  { %v2729_v6 = vmul.f32 %v4922_v30, %v2725_v45  ;;  %v2730_v48 = vmul.f32 %v4922_v30, %v2726_v23 }
 0x912   :  { %v2737_v11 = vmul.f32 %v3126_v61, %v2729_v6  ;;  %v2738_v17 = vmul.f32 %v3126_v61, %v2730_v48 }
 0x914   :  { %v2745_v47 = vadd.f32 %v3127_v51, %v2737_v11  ;;  %v2746_v28 = vadd.f32 %v3127_v51, %v2738_v17 }
 0x916   :  { %4923 = vtanh.f32 %v2745_v47 }
 0x917   :  { %4925 = vtanh.f32 %v2746_v28 }
 0x920   :  { %v4924_v8 = vpop.eup %4923 }
 0x921   :  { %v4926_v55 = vpop.eup %4925  ;;  %4257 = vmatprep.mubr.f32.mxu1 %v4924_v8 }
 0x922   :  { %4258 = vmatmul.mubr.f32.vlgmr.msra.gmra.mrb[22].mxu1 %v4926_v55 }
 0x9f5   :  { %v4259_v38 = vpop.f32.mrb[22].mxu1 }
 0x9f6   :  { %v2844_v53 = vadd.f32 %v4259_v38, %v3128_v34  ;;  %v2838_v22 = vpop.f32.mrb[23].mxu1 }
 0x9f7   :  { %v2839_v39 = vadd.f32 %v3128_v34, %v2838_v22 }
 0x9f8   :  { %2848 = vst [vmem:[#allocation16 + $0x8] sm:$0xff] %v2844_v53 }
 0x9f9   :  { %2847 = vst [vmem:[#allocation16] sm:$0xff] %v2839_v39 }
 0x9fa   :  { %5114 = shalt.err (!%p5111_p12)
}
 0x9fb   :  { %s5115_s29 = scalar_lea.hbm %s6320_s13, 256 }
 0x9fc   :  { %p5116_p13 = scmp.ne.s32.totalorder %s6320_s13, %s5115_s29  ;;  %p5119_p0 = scmp.lt.u32.totalorder %s5115_s29, %s6320_s13 }
 0x9fe   :  { %p5121_p1 = pnand %p5119_p0, %p5116_p13 }
 0xa00   :  { %5124 = shalt.err (!%p5121_p1)
}
 0xa01   :  { %2860 = dma.vmem_to_hbm [thread:$0]  %s2855_s5, 256, %s6320_s13, [#allocation4], %s5139_s20, %s5139_s20, %s5140_s21  }
 0xa02   :  { %5135 = dma.done.wait [#allocation4], 256  }
 0xa03   :  { %5136 = vsyncadd [#allocation4], 4294967040 }
 0xa04   :  { %2864 = vsyncpa [#allocation3], 1 }
 0xa05   :  { %2865 = vsyncpa [#allocation6], 1 }
 0xa06   :  { %2866 = vsyncpa [#allocation9], 1 }
 0xa07   :  { %2867 = vsyncpa [#allocation12], 1 }
 0xa08   :  { %2868 = vsyncpa [#allocation15], 1 }
 0xa09   :  { %2869 = vsyncpa [#allocation4], 1 }

</bundles_post_ra>
